<compile_context>
chip_gen: v7x
topology: tpu7x:2x2x1
jax: 0.10.0
libtpu: 0.0.40
codegen_flags: <defaults>
</compile_context>

<pallas_src>
import functools
import math

import jax
import jax.numpy as jnp
from jax.experimental import pallas as pl
from jax.experimental.pallas import tpu as pltpu


_NEG_BIG = 1e30   # large finite mask bias (avoids -inf -> NaN pathologies)
_LANES = 128      # param-slab / output lane width


# ----------------------------- math helpers -----------------------------
def _erf(x):
    # Abramowitz & Stegun 7.1.26 polynomial (|err| < 1.5e-7); only exp/mul/where,
    # guaranteed to lower in Mosaic.
    a1, a2, a3, a4, a5 = 0.254829592, -0.284496736, 1.421413741, -1.453152027, 1.061405429
    p = 0.3275911
    sgn = jnp.where(x < 0.0, -1.0, 1.0)
    ax = jnp.abs(x)
    t = 1.0 / (1.0 + p * ax)
    poly = ((((a5 * t + a4) * t + a3) * t + a2) * t + a1) * t
    return sgn * (1.0 - poly * jnp.exp(-ax * ax))


def _gelu_exact(x):
    return 0.5 * x * (1.0 + _erf(x * (1.0 / math.sqrt(2.0))))


def _layer_norm(x, gamma, beta, eps=1e-5):
    mu = jnp.mean(x, axis=-1, keepdims=True)
    var = jnp.mean((x - mu) ** 2, axis=-1, keepdims=True)
    return (x - mu) * jax.lax.rsqrt(var + eps) * gamma + beta


# ------------------------------- kernel ----------------------------------
def encoder_kernel(src_ref, mask_ref, p_ref, out_ref, *, d_inner, n_heads, n_stacks):
    N, D = src_ref.shape            # (B*S, d_model)
    B, S = mask_ref.shape
    H = n_heads
    dh = D // H
    DI = d_inner
    LANES = p_ref.shape[1]          # 128
    RPL = 8 + 2 * D + DI            # slab rows per layer (vector block + wqkv + w1 + w2)

    x = src_ref[...]                # (N, D); activations stay VMEM-resident all layers

    # Additive key-padding bias, hoisted & materialized ONCE for all layers/heads.
    # Batch ordering is head-major (index = h*B + b) to match the head-batched
    # q/k/v built below.
    mb = (mask_ref[...] - 1.0) * _NEG_BIG                               # (B, S): 0 / -1e30
    mask_bias = jnp.broadcast_to(mb[None, :, None, :], (H, B, S, S)).reshape(H * B, S, S)

    for layer in range(n_stacks):   # static unroll: whole stack in one kernel
        base = layer * RPL
        # --- per-layer parameter loads at use point (single slab operand) ---
        ln1_g = p_ref[base + 0:base + 1, :D]
        ln1_b = p_ref[base + 1:base + 2, :D]
        ln2_g = p_ref[base + 2:base + 3, :D]
        ln2_b = p_ref[base + 3:base + 4, :D]
        bqkv = p_ref[base + 4:base + 5, :]                  # (1,128); cols >= 3D are 0
        b1 = p_ref[base + 5:base + 6, :]                    # (1,128); cols >= DI are 0
        b2 = p_ref[base + 6:base + 7, :D]
        wqkv = p_ref[base + 8:base + 8 + D, :]              # (D,128); scale folded into Q cols
        w1 = p_ref[base + 8 + D:base + 8 + 2 * D, :]        # (D,128); cols >= DI are 0
        w2 = p_ref[base + 8 + 2 * D:base + 8 + 2 * D + DI, :D]   # (DI, D)

        # ---------------- MHA sublayer ----------------
        xn = _layer_norm(x, ln1_g, ln1_b)
        # One fused, lane-dense QKV matmul: (N, D) x (D, 128) -> (N, 128).
        qkv = jnp.dot(xn, wqkv, preferred_element_type=jnp.float32) + bqkv

        def heads(col0):
            # Rearrange head blocks from the lane dim into the leading batch dim:
            # (N, dh) x H -> (H*B, S, dh).  2-D sublane concatenate + cheap
            # leading-dim reshape (no 4-D transpose needed).
            parts = [qkv[:, col0 + h * dh: col0 + (h + 1) * dh] for h in range(H)]
            return jnp.concatenate(parts, axis=0).reshape(H * B, S, dh)

        qh, kh, vh = heads(0), heads(D), heads(2 * D)
        # Head-batched score / context matmuls (single dot_general each).
        s = jnp.einsum('bqd,bkd->bqk', qh, kh,
                       preferred_element_type=jnp.float32) + mask_bias
        s = s - jnp.max(s, axis=-1, keepdims=True)
        e = jnp.exp(s)
        # Reciprocal on the EUP slot; approx=False keeps the 1e-4 tolerance.
        p_attn = e * pl.reciprocal(jnp.sum(e, axis=-1, keepdims=True), approx=False)
        o = jnp.einsum('bqk,bkd->bqd', p_attn, vh,
                       preferred_element_type=jnp.float32)             # (H*B, S, dh)
        merged = jnp.concatenate(
            [o[h * B:(h + 1) * B].reshape(N, dh) for h in range(H)], axis=-1)  # (N, D)
        y = merged + xn                  # residual onto LN output (as in the module)

        # ---------------- MLP sublayer ----------------
        x2 = _layer_norm(y, ln2_g, ln2_b)
        h1 = jnp.dot(x2, w1, preferred_element_type=jnp.float32) + b1  # (N,128), cols>=DI are 0
        h2 = jnp.dot(h1[:, :DI], w2, preferred_element_type=jnp.float32) + b2
        x = _gelu_exact(h2) + x2         # GELU applied LAST (module's MLP ordering)

    fb = n_stacks * RPL
    final_g = p_ref[fb:fb + 1, :D]
    final_b = p_ref[fb + 1:fb + 2, :D]
    res = _layer_norm(x, final_g, final_b)                              # (N, D)
    # Lane-dense (unmasked) store: pad D=32 -> 128 lanes with one concatenate.
    out_ref[...] = jnp.concatenate(
        [res, jnp.zeros((N, LANES - D), jnp.float32)], axis=-1)


# ------------------------------ wrapper -----------------------------------
@functools.partial(jax.jit, static_argnames=("d_inner", "n_heads", "n_stacks"))
def encoder_forward(src, key_mask, param_slab, *, d_inner, n_heads, n_stacks):
    B, S, D = src.shape
    lanes = param_slab.shape[1]
    kernel = functools.partial(encoder_kernel, d_inner=d_inner,
                               n_heads=n_heads, n_stacks=n_stacks)
    # Single fused grid-less invocation: whole batch + all layer weights are
    # VMEM-resident (<1 MiB here); activations never round-trip HBM.
    # TODO(synk): once B*S grows, add a row-tiled grid with
    # dimension_semantics=("parallel",) to use both v7x TensorCores.
    out_padded = pl.pallas_call(
        kernel,
        out_shape=jax.ShapeDtypeStruct((B * S, lanes), jnp.float32),
        in_specs=[pl.BlockSpec(memory_space=pltpu.MemorySpace.VMEM)] * 3,
        out_specs=pl.BlockSpec(memory_space=pltpu.MemorySpace.VMEM),
    )(src.reshape(B * S, D), key_mask.astype(jnp.float32), param_slab)
    return out_padded[:, :D].reshape(B, S, D)


# ------------------------------- params -----------------------------------
def init_layer_params_raw(key, d_model, d_inner):
    ks = jax.random.split(key, 10)

    def lin(kw, kb, fan_in, fan_out):
        bound = 1.0 / math.sqrt(fan_in)
        w = jax.random.uniform(kw, (fan_in, fan_out), jnp.float32, -bound, bound)
        b = jax.random.uniform(kb, (1, fan_out), jnp.float32, -bound, bound)
        return w, b

    wq, bq = lin(ks[0], ks[1], d_model, d_model)
    wk, bk = lin(ks[2], ks[3], d_model, d_model)
    wv, bv = lin(ks[4], ks[5], d_model, d_model)
    w1, b1 = lin(ks[6], ks[7], d_model, d_inner)
    w2, b2 = lin(ks[8], ks[9], d_inner, d_model)
    ones = jnp.ones((1, d_model), jnp.float32)
    zeros = jnp.zeros((1, d_model), jnp.float32)
    # order: ln1_g, ln1_b, wq, bq, wk, bk, wv, bv, ln2_g, ln2_b, w1, b1, w2, b2
    return (ones, zeros, wq, bq, wk, bk, wv, bv, ones, zeros, w1, b1, w2, b2)


def pack_encoder_params(raw_layer_params, final_g, final_b, *, d_model, d_inner, n_heads):
    """Pack every layer's params + final LN into ONE (rows, 128) f32 slab.

    Per-layer layout (rows, 8-aligned blocks):
      rows [0,8)   : ln1_g, ln1_b, ln2_g, ln2_b, bqkv, b1, b2 (one vector per row)
      rows [8,8+D) : wqkv (D x 3D)    -- softmax scale folded into the Q columns
      next D rows  : w1   (D x d_inner)
      next DI rows : w2   (d_inner x D)
    Final 8-row block: final LayerNorm gamma / beta.
    """
    D, DI = d_model, d_inner
    dh = D // n_heads
    scale = 1.0 / math.sqrt(dh)
    rpl = 8 + 2 * D + DI
    rows = len(raw_layer_params) * rpl + 8
    slab = jnp.zeros((rows, _LANES), jnp.float32)
    for i, raw in enumerate(raw_layer_params):
        (ln1_g, ln1_b, wq, bq, wk, bk, wv, bv, ln2_g, ln2_b, w1, b1, w2, b2) = raw
        base = i * rpl
        wqkv = jnp.concatenate([wq * scale, wk, wv], axis=1)   # (D, 3D), scale in Q
        bqkv = jnp.concatenate([bq * scale, bk, bv], axis=1)   # (1, 3D)
        slab = slab.at[base + 0, :D].set(ln1_g.reshape(-1))
        slab = slab.at[base + 1, :D].set(ln1_b.reshape(-1))
        slab = slab.at[base + 2, :D].set(ln2_g.reshape(-1))
        slab = slab.at[base + 3, :D].set(ln2_b.reshape(-1))
        slab = slab.at[base + 4, :3 * D].set(bqkv.reshape(-1))
        slab = slab.at[base + 5, :DI].set(b1.reshape(-1))
        slab = slab.at[base + 6, :D].set(b2.reshape(-1))
        slab = slab.at[base + 8:base + 8 + D, :3 * D].set(wqkv)
        slab = slab.at[base + 8 + D:base + 8 + 2 * D, :DI].set(w1)
        slab = slab.at[base + 8 + 2 * D:base + 8 + 2 * D + DI, :D].set(w2)
    fb = len(raw_layer_params) * rpl
    slab = slab.at[fb, :D].set(final_g.reshape(-1))
    slab = slab.at[fb + 1, :D].set(final_b.reshape(-1))
    return slab


# ------------------------ pure-JAX reference -------------------------------
def encoder_ref(src, key_mask, raw_layer_params, final_g, final_b, n_heads):
    B, S, D = src.shape
    dh = D // n_heads
    bias4 = (key_mask - 1.0)[:, None, None, :] * _NEG_BIG   # (B,1,1,S)
    x = src
    for raw in raw_layer_params:
        (ln1_g, ln1_b, wq, bq, wk, bk, wv, bv, ln2_g, ln2_b, w1, b1, w2, b2) = raw
        xn = _layer_norm(x, ln1_g, ln1_b)

        def split(t):
            return t.reshape(B, S, n_heads, dh).transpose(0, 2, 1, 3)

        q = split(xn @ wq + bq)
        k = split(xn @ wk + bk)
        v = split(xn @ wv + bv)
        s = jnp.einsum('bhqd,bhkd->bhqk', q, k) / math.sqrt(dh) + bias4
        p = jax.nn.softmax(s, axis=-1)
        y = jnp.einsum('bhqk,bhkd->bhqd', p, v).transpose(0, 2, 1, 3).reshape(B, S, D)
        y = y + xn
        x2 = _layer_norm(y, ln2_g, ln2_b)
        h = (x2 @ w1 + b1) @ w2 + b2
        x = jax.nn.gelu(h, approximate=False) + x2
    return _layer_norm(x, final_g, final_b)


# --------------------------------- main ------------------------------------
if __name__ == "__main__":
    d_model, d_inner, n_heads, n_stacks = 32, 64, 4, 2
    B, S = 2, 8

    key = jax.random.PRNGKey(0)
    k_src, k_param = jax.random.split(key)
    src = jax.random.normal(k_src, (B, S, d_model), jnp.float32)

    # key-padding mask: 1.0 = attend, 0.0 = pad.
    mask = jnp.ones((B, S), jnp.float32).at[1, 6:].set(0.0)

    layer_keys = jax.random.split(k_param, n_stacks)
    raw_params = [init_layer_params_raw(k, d_model, d_inner) for k in layer_keys]
    final_g = jnp.ones((1, d_model), jnp.float32)
    final_b = jnp.zeros((1, d_model), jnp.float32)

    param_slab = pack_encoder_params(raw_params, final_g, final_b,
                                     d_model=d_model, d_inner=d_inner, n_heads=n_heads)

    out = encoder_forward(src, mask, param_slab,
                          d_inner=d_inner, n_heads=n_heads, n_stacks=n_stacks)
    out = jax.block_until_ready(out)

    ref = encoder_ref(src, mask, raw_params, final_g, final_b, n_heads)
    assert out.shape == (B, S, d_model)
    max_err = float(jnp.max(jnp.abs(out - ref)))
    assert jnp.allclose(out, ref, atol=1e-4, rtol=1e-4), f"max_err={max_err}"

    print("KERNEL_OK")
</pallas_src>

<mosaic_0001>
module attributes {stable_mosaic.version = 11 : i64} {
  func.func @encoder_kernel(%arg0: memref<16x32xf32, #tpu.memory_space<vmem>>, %arg1: memref<2x8xf32, #tpu.memory_space<vmem>>, %arg2: memref<280x128xf32, #tpu.memory_space<vmem>>, %arg3: memref<16x128xf32, #tpu.memory_space<vmem>>) attributes {dimension_semantics = [], scalar_prefetch = 0 : i64, scratch_operands = 0 : i64, tpu.core_type = #tpu.core_type<tc>} {
    %c0 = arith.constant 0 : index
    %c0_0 = arith.constant 0 : index
    %0 = vector.load %arg0[%c0, %c0_0] : memref<16x32xf32, #tpu.memory_space<vmem>>, vector<16x32xf32>
    %c0_1 = arith.constant 0 : index
    %c0_2 = arith.constant 0 : index
    %1 = vector.load %arg1[%c0_1, %c0_2] : memref<2x8xf32, #tpu.memory_space<vmem>>, vector<2x8xf32>
    %cst = arith.constant 1.000000e+00 : f32
    %2 = vector.broadcast %cst : f32 to vector<2x8xf32>
    %3 = arith.subf %1, %2 : vector<2x8xf32>
    %cst_3 = arith.constant 1.000000e+30 : f32
    %4 = vector.broadcast %cst_3 : f32 to vector<2x8xf32>
    %5 = arith.mulf %3, %4 : vector<2x8xf32>
    %6 = vector.shape_cast %5 : vector<2x8xf32> to vector<1x2x1x8xf32>
    %7 = vector.shape_cast %6 : vector<1x2x1x8xf32> to vector<1x2x1x8xf32>
    %8 = vector.broadcast %7 : vector<1x2x1x8xf32> to vector<4x2x8x8xf32>
    %9 = vector.shape_cast %8 : vector<4x2x8x8xf32> to vector<8x8x8xf32>
    %c0_4 = arith.constant 0 : index
    %c0_5 = arith.constant 0 : index
    %10 = vector.load %arg2[%c0_4, %c0_5] : memref<280x128xf32, #tpu.memory_space<vmem>>, vector<1x32xf32>
    %c1 = arith.constant 1 : index
    %c0_6 = arith.constant 0 : index
    %11 = vector.load %arg2[%c1, %c0_6] : memref<280x128xf32, #tpu.memory_space<vmem>>, vector<1x32xf32>
    %c2 = arith.constant 2 : index
    %c0_7 = arith.constant 0 : index
    %12 = vector.load %arg2[%c2, %c0_7] : memref<280x128xf32, #tpu.memory_space<vmem>>, vector<1x32xf32>
    %c3 = arith.constant 3 : index
    %c0_8 = arith.constant 0 : index
    %13 = vector.load %arg2[%c3, %c0_8] : memref<280x128xf32, #tpu.memory_space<vmem>>, vector<1x32xf32>
    %c4 = arith.constant 4 : index
    %c0_9 = arith.constant 0 : index
    %14 = vector.load %arg2[%c4, %c0_9] : memref<280x128xf32, #tpu.memory_space<vmem>>, vector<1x128xf32>
    %c5 = arith.constant 5 : index
    %c0_10 = arith.constant 0 : index
    %15 = vector.load %arg2[%c5, %c0_10] : memref<280x128xf32, #tpu.memory_space<vmem>>, vector<1x128xf32>
    %c6 = arith.constant 6 : index
    %c0_11 = arith.constant 0 : index
    %16 = vector.load %arg2[%c6, %c0_11] : memref<280x128xf32, #tpu.memory_space<vmem>>, vector<1x32xf32>
    %c8 = arith.constant 8 : index
    %c0_12 = arith.constant 0 : index
    %17 = vector.load %arg2[%c8, %c0_12] : memref<280x128xf32, #tpu.memory_space<vmem>>, vector<32x128xf32>
    %c40 = arith.constant 40 : index
    %c0_13 = arith.constant 0 : index
    %18 = vector.load %arg2[%c40, %c0_13] : memref<280x128xf32, #tpu.memory_space<vmem>>, vector<32x128xf32>
    %c72 = arith.constant 72 : index
    %c0_14 = arith.constant 0 : index
    %19 = vector.load %arg2[%c72, %c0_14] : memref<280x128xf32, #tpu.memory_space<vmem>>, vector<64x32xf32>
    %cst_15 = arith.constant dense<0.000000e+00> : vector<16xf32>
    %20 = vector.multi_reduction <add>, %0, %cst_15 [1] : vector<16x32xf32> to vector<16xf32>
    %21 = vector.shape_cast %20 : vector<16xf32> to vector<16x1xf32>
    %cst_16 = arith.constant 3.200000e+01 : f32
    %22 = vector.broadcast %cst_16 : f32 to vector<16x1xf32>
    %23 = arith.divf %21, %22 : vector<16x1xf32>
    %24 = vector.broadcast %23 : vector<16x1xf32> to vector<16x32xf32>
    %25 = arith.subf %0, %24 : vector<16x32xf32>
    %26 = arith.mulf %25, %25 : vector<16x32xf32>
    %cst_17 = arith.constant dense<0.000000e+00> : vector<16xf32>
    %27 = vector.multi_reduction <add>, %26, %cst_17 [1] : vector<16x32xf32> to vector<16xf32>
    %28 = vector.shape_cast %27 : vector<16xf32> to vector<16x1xf32>
    %cst_18 = arith.constant 3.200000e+01 : f32
    %29 = vector.broadcast %cst_18 : f32 to vector<16x1xf32>
    %30 = arith.divf %28, %29 : vector<16x1xf32>
    %31 = vector.broadcast %23 : vector<16x1xf32> to vector<16x32xf32>
    %32 = arith.subf %0, %31 : vector<16x32xf32>
    %cst_19 = arith.constant 9.99999974E-6 : f32
    %33 = vector.broadcast %cst_19 : f32 to vector<16x1xf32>
    %34 = arith.addf %30, %33 : vector<16x1xf32>
    %35 = math.rsqrt %34 : vector<16x1xf32>
    %36 = vector.broadcast %35 : vector<16x1xf32> to vector<16x32xf32>
    %37 = arith.mulf %32, %36 : vector<16x32xf32>
    %38 = vector.broadcast %10 : vector<1x32xf32> to vector<16x32xf32>
    %39 = arith.mulf %37, %38 : vector<16x32xf32>
    %40 = vector.broadcast %11 : vector<1x32xf32> to vector<16x32xf32>
    %41 = arith.addf %39, %40 : vector<16x32xf32>
    %cst_20 = arith.constant dense<0.000000e+00> : vector<16x128xf32>
    %42 = tpu.matmul %41, %17, %cst_20 {dimension_numbers = #tpu.dot_dimension_numbers<[1], [0], [0], [1], [0, 0, 1, 1], [], []>} : vector<16x32xf32>, vector<32x128xf32>, vector<16x128xf32> -> vector<16x128xf32>
    %43 = vector.broadcast %14 : vector<1x128xf32> to vector<16x128xf32>
    %44 = arith.addf %42, %43 : vector<16x128xf32>
    %45 = vector.extract_strided_slice %44 {offsets = [0, 0], sizes = [16, 8], strides = [1, 1]} : vector<16x128xf32> to vector<16x8xf32>
    %46 = vector.extract_strided_slice %44 {offsets = [0, 8], sizes = [16, 8], strides = [1, 1]} : vector<16x128xf32> to vector<16x8xf32>
    %47 = vector.extract_strided_slice %44 {offsets = [0, 16], sizes = [16, 8], strides = [1, 1]} : vector<16x128xf32> to vector<16x8xf32>
    %48 = vector.extract_strided_slice %44 {offsets = [0, 24], sizes = [16, 8], strides = [1, 1]} : vector<16x128xf32> to vector<16x8xf32>
    %49 = tpu.concatenate %45, %46, %47, %48 in 0 : vector<16x8xf32>, vector<16x8xf32>, vector<16x8xf32>, vector<16x8xf32> -> vector<64x8xf32>
    %50 = vector.shape_cast %49 : vector<64x8xf32> to vector<8x8x8xf32>
    %51 = vector.extract_strided_slice %44 {offsets = [0, 32], sizes = [16, 8], strides = [1, 1]} : vector<16x128xf32> to vector<16x8xf32>
    %52 = vector.extract_strided_slice %44 {offsets = [0, 40], sizes = [16, 8], strides = [1, 1]} : vector<16x128xf32> to vector<16x8xf32>
    %53 = vector.extract_strided_slice %44 {offsets = [0, 48], sizes = [16, 8], strides = [1, 1]} : vector<16x128xf32> to vector<16x8xf32>
    %54 = vector.extract_strided_slice %44 {offsets = [0, 56], sizes = [16, 8], strides = [1, 1]} : vector<16x128xf32> to vector<16x8xf32>
    %55 = tpu.concatenate %51, %52, %53, %54 in 0 : vector<16x8xf32>, vector<16x8xf32>, vector<16x8xf32>, vector<16x8xf32> -> vector<64x8xf32>
    %56 = vector.shape_cast %55 : vector<64x8xf32> to vector<8x8x8xf32>
    %57 = vector.extract_strided_slice %44 {offsets = [0, 64], sizes = [16, 8], strides = [1, 1]} : vector<16x128xf32> to vector<16x8xf32>
    %58 = vector.extract_strided_slice %44 {offsets = [0, 72], sizes = [16, 8], strides = [1, 1]} : vector<16x128xf32> to vector<16x8xf32>
    %59 = vector.extract_strided_slice %44 {offsets = [0, 80], sizes = [16, 8], strides = [1, 1]} : vector<16x128xf32> to vector<16x8xf32>
    %60 = vector.extract_strided_slice %44 {offsets = [0, 88], sizes = [16, 8], strides = [1, 1]} : vector<16x128xf32> to vector<16x8xf32>
    %61 = tpu.concatenate %57, %58, %59, %60 in 0 : vector<16x8xf32>, vector<16x8xf32>, vector<16x8xf32>, vector<16x8xf32> -> vector<64x8xf32>
    %62 = vector.shape_cast %61 : vector<64x8xf32> to vector<8x8x8xf32>
    "tpu.trace_start"() <{level = 10 : i32, message = "bqd,bkd->bqk"}> : () -> ()
    %cst_21 = arith.constant dense<0.000000e+00> : vector<8x8x8xf32>
    %63 = tpu.matmul %50, %56, %cst_21 {dimension_numbers = #tpu.dot_dimension_numbers<[2], [2], [1], [1], [0, 0, 0, 1, 1, 1], [0], [0]>} : vector<8x8x8xf32>, vector<8x8x8xf32>, vector<8x8x8xf32> -> vector<8x8x8xf32>
    "tpu.trace_stop"() : () -> ()
    %64 = arith.addf %63, %9 : vector<8x8x8xf32>
    %cst_22 = arith.constant dense<0xFF800000> : vector<8x8xf32>
    %65 = vector.multi_reduction <maximumf>, %64, %cst_22 [2] : vector<8x8x8xf32> to vector<8x8xf32>
    %66 = vector.shape_cast %65 : vector<8x8xf32> to vector<8x8x1xf32>
    %67 = vector.broadcast %66 : vector<8x8x1xf32> to vector<8x8x8xf32>
    %68 = arith.subf %64, %67 : vector<8x8x8xf32>
    %69 = math.exp %68 : vector<8x8x8xf32>
    %cst_23 = arith.constant dense<0.000000e+00> : vector<8x8xf32>
    %70 = vector.multi_reduction <add>, %69, %cst_23 [2] : vector<8x8x8xf32> to vector<8x8xf32>
    %71 = vector.shape_cast %70 : vector<8x8xf32> to vector<8x8x1xf32>
    %72 = tpu.reciprocal %71 : vector<8x8x1xf32> -> vector<8x8x1xf32>
    %73 = vector.broadcast %72 : vector<8x8x1xf32> to vector<8x8x8xf32>
    %74 = arith.mulf %69, %73 : vector<8x8x8xf32>
    "tpu.trace_start"() <{level = 10 : i32, message = "bqk,bkd->bqd"}> : () -> ()
    %cst_24 = arith.constant dense<0.000000e+00> : vector<8x8x8xf32>
    %75 = tpu.matmul %74, %62, %cst_24 {dimension_numbers = #tpu.dot_dimension_numbers<[2], [1], [1], [2], [0, 0, 0, 1, 1, 2], [0], [0]>} : vector<8x8x8xf32>, vector<8x8x8xf32>, vector<8x8x8xf32> -> vector<8x8x8xf32>
    "tpu.trace_stop"() : () -> ()
    %76 = vector.extract_strided_slice %75 {offsets = [0, 0, 0], sizes = [2, 8, 8], strides = [1, 1, 1]} : vector<8x8x8xf32> to vector<2x8x8xf32>
    %77 = vector.shape_cast %76 : vector<2x8x8xf32> to vector<16x8xf32>
    %78 = vector.extract_strided_slice %75 {offsets = [2, 0, 0], sizes = [2, 8, 8], strides = [1, 1, 1]} : vector<8x8x8xf32> to vector<2x8x8xf32>
    %79 = vector.shape_cast %78 : vector<2x8x8xf32> to vector<16x8xf32>
    %80 = vector.extract_strided_slice %75 {offsets = [4, 0, 0], sizes = [2, 8, 8], strides = [1, 1, 1]} : vector<8x8x8xf32> to vector<2x8x8xf32>
    %81 = vector.shape_cast %80 : vector<2x8x8xf32> to vector<16x8xf32>
    %82 = vector.extract_strided_slice %75 {offsets = [6, 0, 0], sizes = [2, 8, 8], strides = [1, 1, 1]} : vector<8x8x8xf32> to vector<2x8x8xf32>
    %83 = vector.shape_cast %82 : vector<2x8x8xf32> to vector<16x8xf32>
    %84 = tpu.concatenate %77, %79, %81, %83 in 1 : vector<16x8xf32>, vector<16x8xf32>, vector<16x8xf32>, vector<16x8xf32> -> vector<16x32xf32>
    %85 = arith.addf %84, %41 : vector<16x32xf32>
    %cst_25 = arith.constant dense<0.000000e+00> : vector<16xf32>
    %86 = vector.multi_reduction <add>, %85, %cst_25 [1] : vector<16x32xf32> to vector<16xf32>
    %87 = vector.shape_cast %86 : vector<16xf32> to vector<16x1xf32>
    %cst_26 = arith.constant 3.200000e+01 : f32
    %88 = vector.broadcast %cst_26 : f32 to vector<16x1xf32>
    %89 = arith.divf %87, %88 : vector<16x1xf32>
    %90 = vector.broadcast %89 : vector<16x1xf32> to vector<16x32xf32>
    %91 = arith.subf %85, %90 : vector<16x32xf32>
    %92 = arith.mulf %91, %91 : vector<16x32xf32>
    %cst_27 = arith.constant dense<0.000000e+00> : vector<16xf32>
    %93 = vector.multi_reduction <add>, %92, %cst_27 [1] : vector<16x32xf32> to vector<16xf32>
    %94 = vector.shape_cast %93 : vector<16xf32> to vector<16x1xf32>
    %cst_28 = arith.constant 3.200000e+01 : f32
    %95 = vector.broadcast %cst_28 : f32 to vector<16x1xf32>
    %96 = arith.divf %94, %95 : vector<16x1xf32>
    %97 = vector.broadcast %89 : vector<16x1xf32> to vector<16x32xf32>
    %98 = arith.subf %85, %97 : vector<16x32xf32>
    %cst_29 = arith.constant 9.99999974E-6 : f32
    %99 = vector.broadcast %cst_29 : f32 to vector<16x1xf32>
    %100 = arith.addf %96, %99 : vector<16x1xf32>
    %101 = math.rsqrt %100 : vector<16x1xf32>
    %102 = vector.broadcast %101 : vector<16x1xf32> to vector<16x32xf32>
    %103 = arith.mulf %98, %102 : vector<16x32xf32>
    %104 = vector.broadcast %12 : vector<1x32xf32> to vector<16x32xf32>
    %105 = arith.mulf %103, %104 : vector<16x32xf32>
    %106 = vector.broadcast %13 : vector<1x32xf32> to vector<16x32xf32>
    %107 = arith.addf %105, %106 : vector<16x32xf32>
    %cst_30 = arith.constant dense<0.000000e+00> : vector<16x128xf32>
    %108 = tpu.matmul %107, %18, %cst_30 {dimension_numbers = #tpu.dot_dimension_numbers<[1], [0], [0], [1], [0, 0, 1, 1], [], []>} : vector<16x32xf32>, vector<32x128xf32>, vector<16x128xf32> -> vector<16x128xf32>
    %109 = vector.broadcast %15 : vector<1x128xf32> to vector<16x128xf32>
    %110 = arith.addf %108, %109 : vector<16x128xf32>
    %111 = vector.extract_strided_slice %110 {offsets = [0, 0], sizes = [16, 64], strides = [1, 1]} : vector<16x128xf32> to vector<16x64xf32>
    %cst_31 = arith.constant dense<0.000000e+00> : vector<16x32xf32>
    %112 = tpu.matmul %111, %19, %cst_31 {dimension_numbers = #tpu.dot_dimension_numbers<[1], [0], [0], [1], [0, 0, 1, 1], [], []>} : vector<16x64xf32>, vector<64x32xf32>, vector<16x32xf32> -> vector<16x32xf32>
    %113 = vector.broadcast %16 : vector<1x32xf32> to vector<16x32xf32>
    %114 = arith.addf %112, %113 : vector<16x32xf32>
    %cst_32 = arith.constant 5.000000e-01 : f32
    %115 = vector.broadcast %cst_32 : f32 to vector<16x32xf32>
    %116 = arith.mulf %115, %114 : vector<16x32xf32>
    %cst_33 = arith.constant 0.707106769 : f32
    %117 = vector.broadcast %cst_33 : f32 to vector<16x32xf32>
    %118 = arith.mulf %114, %117 : vector<16x32xf32>
    %cst_34 = arith.constant 0.000000e+00 : f32
    %119 = vector.broadcast %cst_34 : f32 to vector<16x32xf32>
    %120 = arith.cmpf olt, %118, %119 : vector<16x32xf32>
    %cst_35 = arith.constant -1.000000e+00 : f32
    %cst_36 = arith.constant 1.000000e+00 : f32
    %121 = vector.broadcast %cst_35 : f32 to vector<16x32xf32>
    %122 = vector.broadcast %cst_36 : f32 to vector<16x32xf32>
    %123 = arith.select %120, %121, %122 : vector<16x32xi1>, vector<16x32xf32>
    %124 = math.absf %118 : vector<16x32xf32>
    %cst_37 = arith.constant 0.327591091 : f32
    %125 = vector.broadcast %cst_37 : f32 to vector<16x32xf32>
    %126 = arith.mulf %125, %124 : vector<16x32xf32>
    %cst_38 = arith.constant 1.000000e+00 : f32
    %127 = vector.broadcast %cst_38 : f32 to vector<16x32xf32>
    %128 = arith.addf %127, %126 : vector<16x32xf32>
    %cst_39 = arith.constant 1.000000e+00 : f32
    %129 = vector.broadcast %cst_39 : f32 to vector<16x32xf32>
    %130 = arith.divf %129, %128 : vector<16x32xf32>
    %cst_40 = arith.constant 1.06140542 : f32
    %131 = vector.broadcast %cst_40 : f32 to vector<16x32xf32>
    %132 = arith.mulf %131, %130 : vector<16x32xf32>
    %cst_41 = arith.constant -1.45315206 : f32
    %133 = vector.broadcast %cst_41 : f32 to vector<16x32xf32>
    %134 = arith.addf %132, %133 : vector<16x32xf32>
    %135 = arith.mulf %134, %130 : vector<16x32xf32>
    %cst_42 = arith.constant 1.42141378 : f32
    %136 = vector.broadcast %cst_42 : f32 to vector<16x32xf32>
    %137 = arith.addf %135, %136 : vector<16x32xf32>
    %138 = arith.mulf %137, %130 : vector<16x32xf32>
    %cst_43 = arith.constant -0.284496725 : f32
    %139 = vector.broadcast %cst_43 : f32 to vector<16x32xf32>
    %140 = arith.addf %138, %139 : vector<16x32xf32>
    %141 = arith.mulf %140, %130 : vector<16x32xf32>
    %cst_44 = arith.constant 0.254829586 : f32
    %142 = vector.broadcast %cst_44 : f32 to vector<16x32xf32>
    %143 = arith.addf %141, %142 : vector<16x32xf32>
    %144 = arith.mulf %143, %130 : vector<16x32xf32>
    %cst_45 = arith.constant 0.000000e+00 : f32
    %145 = vector.broadcast %cst_45 : f32 to vector<16x32xf32>
    %146 = arith.subf %145, %124 : vector<16x32xf32>
    %147 = arith.mulf %146, %124 : vector<16x32xf32>
    %148 = math.exp %147 : vector<16x32xf32>
    %149 = arith.mulf %144, %148 : vector<16x32xf32>
    %cst_46 = arith.constant 1.000000e+00 : f32
    %150 = vector.broadcast %cst_46 : f32 to vector<16x32xf32>
    %151 = arith.subf %150, %149 : vector<16x32xf32>
    %152 = arith.mulf %123, %151 : vector<16x32xf32>
    %cst_47 = arith.constant 1.000000e+00 : f32
    %153 = vector.broadcast %cst_47 : f32 to vector<16x32xf32>
    %154 = arith.addf %153, %152 : vector<16x32xf32>
    %155 = arith.mulf %116, %154 : vector<16x32xf32>
    %156 = arith.addf %155, %107 : vector<16x32xf32>
    %c136 = arith.constant 136 : index
    %c0_48 = arith.constant 0 : index
    %157 = vector.load %arg2[%c136, %c0_48] : memref<280x128xf32, #tpu.memory_space<vmem>>, vector<1x32xf32>
    %c137 = arith.constant 137 : index
    %c0_49 = arith.constant 0 : index
    %158 = vector.load %arg2[%c137, %c0_49] : memref<280x128xf32, #tpu.memory_space<vmem>>, vector<1x32xf32>
    %c138 = arith.constant 138 : index
    %c0_50 = arith.constant 0 : index
    %159 = vector.load %arg2[%c138, %c0_50] : memref<280x128xf32, #tpu.memory_space<vmem>>, vector<1x32xf32>
    %c139 = arith.constant 139 : index
    %c0_51 = arith.constant 0 : index
    %160 = vector.load %arg2[%c139, %c0_51] : memref<280x128xf32, #tpu.memory_space<vmem>>, vector<1x32xf32>
    %c140 = arith.constant 140 : index
    %c0_52 = arith.constant 0 : index
    %161 = vector.load %arg2[%c140, %c0_52] : memref<280x128xf32, #tpu.memory_space<vmem>>, vector<1x128xf32>
    %c141 = arith.constant 141 : index
    %c0_53 = arith.constant 0 : index
    %162 = vector.load %arg2[%c141, %c0_53] : memref<280x128xf32, #tpu.memory_space<vmem>>, vector<1x128xf32>
    %c142 = arith.constant 142 : index
    %c0_54 = arith.constant 0 : index
    %163 = vector.load %arg2[%c142, %c0_54] : memref<280x128xf32, #tpu.memory_space<vmem>>, vector<1x32xf32>
    %c144 = arith.constant 144 : index
    %c0_55 = arith.constant 0 : index
    %164 = vector.load %arg2[%c144, %c0_55] : memref<280x128xf32, #tpu.memory_space<vmem>>, vector<32x128xf32>
    %c176 = arith.constant 176 : index
    %c0_56 = arith.constant 0 : index
    %165 = vector.load %arg2[%c176, %c0_56] : memref<280x128xf32, #tpu.memory_space<vmem>>, vector<32x128xf32>
    %c208 = arith.constant 208 : index
    %c0_57 = arith.constant 0 : index
    %166 = vector.load %arg2[%c208, %c0_57] : memref<280x128xf32, #tpu.memory_space<vmem>>, vector<64x32xf32>
    %cst_58 = arith.constant dense<0.000000e+00> : vector<16xf32>
    %167 = vector.multi_reduction <add>, %156, %cst_58 [1] : vector<16x32xf32> to vector<16xf32>
    %168 = vector.shape_cast %167 : vector<16xf32> to vector<16x1xf32>
    %cst_59 = arith.constant 3.200000e+01 : f32
    %169 = vector.broadcast %cst_59 : f32 to vector<16x1xf32>
    %170 = arith.divf %168, %169 : vector<16x1xf32>
    %171 = vector.broadcast %170 : vector<16x1xf32> to vector<16x32xf32>
    %172 = arith.subf %156, %171 : vector<16x32xf32>
    %173 = arith.mulf %172, %172 : vector<16x32xf32>
    %cst_60 = arith.constant dense<0.000000e+00> : vector<16xf32>
    %174 = vector.multi_reduction <add>, %173, %cst_60 [1] : vector<16x32xf32> to vector<16xf32>
    %175 = vector.shape_cast %174 : vector<16xf32> to vector<16x1xf32>
    %cst_61 = arith.constant 3.200000e+01 : f32
    %176 = vector.broadcast %cst_61 : f32 to vector<16x1xf32>
    %177 = arith.divf %175, %176 : vector<16x1xf32>
    %178 = vector.broadcast %170 : vector<16x1xf32> to vector<16x32xf32>
    %179 = arith.subf %156, %178 : vector<16x32xf32>
    %cst_62 = arith.constant 9.99999974E-6 : f32
    %180 = vector.broadcast %cst_62 : f32 to vector<16x1xf32>
    %181 = arith.addf %177, %180 : vector<16x1xf32>
    %182 = math.rsqrt %181 : vector<16x1xf32>
    %183 = vector.broadcast %182 : vector<16x1xf32> to vector<16x32xf32>
    %184 = arith.mulf %179, %183 : vector<16x32xf32>
    %185 = vector.broadcast %157 : vector<1x32xf32> to vector<16x32xf32>
    %186 = arith.mulf %184, %185 : vector<16x32xf32>
    %187 = vector.broadcast %158 : vector<1x32xf32> to vector<16x32xf32>
    %188 = arith.addf %186, %187 : vector<16x32xf32>
    %cst_63 = arith.constant dense<0.000000e+00> : vector<16x128xf32>
    %189 = tpu.matmul %188, %164, %cst_63 {dimension_numbers = #tpu.dot_dimension_numbers<[1], [0], [0], [1], [0, 0, 1, 1], [], []>} : vector<16x32xf32>, vector<32x128xf32>, vector<16x128xf32> -> vector<16x128xf32>
    %190 = vector.broadcast %161 : vector<1x128xf32> to vector<16x128xf32>
    %191 = arith.addf %189, %190 : vector<16x128xf32>
    %192 = vector.extract_strided_slice %191 {offsets = [0, 0], sizes = [16, 8], strides = [1, 1]} : vector<16x128xf32> to vector<16x8xf32>
    %193 = vector.extract_strided_slice %191 {offsets = [0, 8], sizes = [16, 8], strides = [1, 1]} : vector<16x128xf32> to vector<16x8xf32>
    %194 = vector.extract_strided_slice %191 {offsets = [0, 16], sizes = [16, 8], strides = [1, 1]} : vector<16x128xf32> to vector<16x8xf32>
    %195 = vector.extract_strided_slice %191 {offsets = [0, 24], sizes = [16, 8], strides = [1, 1]} : vector<16x128xf32> to vector<16x8xf32>
    %196 = tpu.concatenate %192, %193, %194, %195 in 0 : vector<16x8xf32>, vector<16x8xf32>, vector<16x8xf32>, vector<16x8xf32> -> vector<64x8xf32>
    %197 = vector.shape_cast %196 : vector<64x8xf32> to vector<8x8x8xf32>
    %198 = vector.extract_strided_slice %191 {offsets = [0, 32], sizes = [16, 8], strides = [1, 1]} : vector<16x128xf32> to vector<16x8xf32>
    %199 = vector.extract_strided_slice %191 {offsets = [0, 40], sizes = [16, 8], strides = [1, 1]} : vector<16x128xf32> to vector<16x8xf32>
    %200 = vector.extract_strided_slice %191 {offsets = [0, 48], sizes = [16, 8], strides = [1, 1]} : vector<16x128xf32> to vector<16x8xf32>
    %201 = vector.extract_strided_slice %191 {offsets = [0, 56], sizes = [16, 8], strides = [1, 1]} : vector<16x128xf32> to vector<16x8xf32>
    %202 = tpu.concatenate %198, %199, %200, %201 in 0 : vector<16x8xf32>, vector<16x8xf32>, vector<16x8xf32>, vector<16x8xf32> -> vector<64x8xf32>
    %203 = vector.shape_cast %202 : vector<64x8xf32> to vector<8x8x8xf32>
    %204 = vector.extract_strided_slice %191 {offsets = [0, 64], sizes = [16, 8], strides = [1, 1]} : vector<16x128xf32> to vector<16x8xf32>
    %205 = vector.extract_strided_slice %191 {offsets = [0, 72], sizes = [16, 8], strides = [1, 1]} : vector<16x128xf32> to vector<16x8xf32>
    %206 = vector.extract_strided_slice %191 {offsets = [0, 80], sizes = [16, 8], strides = [1, 1]} : vector<16x128xf32> to vector<16x8xf32>
    %207 = vector.extract_strided_slice %191 {offsets = [0, 88], sizes = [16, 8], strides = [1, 1]} : vector<16x128xf32> to vector<16x8xf32>
    %208 = tpu.concatenate %204, %205, %206, %207 in 0 : vector<16x8xf32>, vector<16x8xf32>, vector<16x8xf32>, vector<16x8xf32> -> vector<64x8xf32>
    %209 = vector.shape_cast %208 : vector<64x8xf32> to vector<8x8x8xf32>
    "tpu.trace_start"() <{level = 10 : i32, message = "bqd,bkd->bqk"}> : () -> ()
    %cst_64 = arith.constant dense<0.000000e+00> : vector<8x8x8xf32>
    %210 = tpu.matmul %197, %203, %cst_64 {dimension_numbers = #tpu.dot_dimension_numbers<[2], [2], [1], [1], [0, 0, 0, 1, 1, 1], [0], [0]>} : vector<8x8x8xf32>, vector<8x8x8xf32>, vector<8x8x8xf32> -> vector<8x8x8xf32>
    "tpu.trace_stop"() : () -> ()
    %211 = arith.addf %210, %9 : vector<8x8x8xf32>
    %cst_65 = arith.constant dense<0xFF800000> : vector<8x8xf32>
    %212 = vector.multi_reduction <maximumf>, %211, %cst_65 [2] : vector<8x8x8xf32> to vector<8x8xf32>
    %213 = vector.shape_cast %212 : vector<8x8xf32> to vector<8x8x1xf32>
    %214 = vector.broadcast %213 : vector<8x8x1xf32> to vector<8x8x8xf32>
    %215 = arith.subf %211, %214 : vector<8x8x8xf32>
    %216 = math.exp %215 : vector<8x8x8xf32>
    %cst_66 = arith.constant dense<0.000000e+00> : vector<8x8xf32>
    %217 = vector.multi_reduction <add>, %216, %cst_66 [2] : vector<8x8x8xf32> to vector<8x8xf32>
    %218 = vector.shape_cast %217 : vector<8x8xf32> to vector<8x8x1xf32>
    %219 = tpu.reciprocal %218 : vector<8x8x1xf32> -> vector<8x8x1xf32>
    %220 = vector.broadcast %219 : vector<8x8x1xf32> to vector<8x8x8xf32>
    %221 = arith.mulf %216, %220 : vector<8x8x8xf32>
    "tpu.trace_start"() <{level = 10 : i32, message = "bqk,bkd->bqd"}> : () -> ()
    %cst_67 = arith.constant dense<0.000000e+00> : vector<8x8x8xf32>
    %222 = tpu.matmul %221, %209, %cst_67 {dimension_numbers = #tpu.dot_dimension_numbers<[2], [1], [1], [2], [0, 0, 0, 1, 1, 2], [0], [0]>} : vector<8x8x8xf32>, vector<8x8x8xf32>, vector<8x8x8xf32> -> vector<8x8x8xf32>
    "tpu.trace_stop"() : () -> ()
    %223 = vector.extract_strided_slice %222 {offsets = [0, 0, 0], sizes = [2, 8, 8], strides = [1, 1, 1]} : vector<8x8x8xf32> to vector<2x8x8xf32>
    %224 = vector.shape_cast %223 : vector<2x8x8xf32> to vector<16x8xf32>
    %225 = vector.extract_strided_slice %222 {offsets = [2, 0, 0], sizes = [2, 8, 8], strides = [1, 1, 1]} : vector<8x8x8xf32> to vector<2x8x8xf32>
    %226 = vector.shape_cast %225 : vector<2x8x8xf32> to vector<16x8xf32>
    %227 = vector.extract_strided_slice %222 {offsets = [4, 0, 0], sizes = [2, 8, 8], strides = [1, 1, 1]} : vector<8x8x8xf32> to vector<2x8x8xf32>
    %228 = vector.shape_cast %227 : vector<2x8x8xf32> to vector<16x8xf32>
    %229 = vector.extract_strided_slice %222 {offsets = [6, 0, 0], sizes = [2, 8, 8], strides = [1, 1, 1]} : vector<8x8x8xf32> to vector<2x8x8xf32>
    %230 = vector.shape_cast %229 : vector<2x8x8xf32> to vector<16x8xf32>
    %231 = tpu.concatenate %224, %226, %228, %230 in 1 : vector<16x8xf32>, vector<16x8xf32>, vector<16x8xf32>, vector<16x8xf32> -> vector<16x32xf32>
    %232 = arith.addf %231, %188 : vector<16x32xf32>
    %cst_68 = arith.constant dense<0.000000e+00> : vector<16xf32>
    %233 = vector.multi_reduction <add>, %232, %cst_68 [1] : vector<16x32xf32> to vector<16xf32>
    %234 = vector.shape_cast %233 : vector<16xf32> to vector<16x1xf32>
    %cst_69 = arith.constant 3.200000e+01 : f32
    %235 = vector.broadcast %cst_69 : f32 to vector<16x1xf32>
    %236 = arith.divf %234, %235 : vector<16x1xf32>
    %237 = vector.broadcast %236 : vector<16x1xf32> to vector<16x32xf32>
    %238 = arith.subf %232, %237 : vector<16x32xf32>
    %239 = arith.mulf %238, %238 : vector<16x32xf32>
    %cst_70 = arith.constant dense<0.000000e+00> : vector<16xf32>
    %240 = vector.multi_reduction <add>, %239, %cst_70 [1] : vector<16x32xf32> to vector<16xf32>
    %241 = vector.shape_cast %240 : vector<16xf32> to vector<16x1xf32>
    %cst_71 = arith.constant 3.200000e+01 : f32
    %242 = vector.broadcast %cst_71 : f32 to vector<16x1xf32>
    %243 = arith.divf %241, %242 : vector<16x1xf32>
    %244 = vector.broadcast %236 : vector<16x1xf32> to vector<16x32xf32>
    %245 = arith.subf %232, %244 : vector<16x32xf32>
    %cst_72 = arith.constant 9.99999974E-6 : f32
    %246 = vector.broadcast %cst_72 : f32 to vector<16x1xf32>
    %247 = arith.addf %243, %246 : vector<16x1xf32>
    %248 = math.rsqrt %247 : vector<16x1xf32>
    %249 = vector.broadcast %248 : vector<16x1xf32> to vector<16x32xf32>
    %250 = arith.mulf %245, %249 : vector<16x32xf32>
    %251 = vector.broadcast %159 : vector<1x32xf32> to vector<16x32xf32>
    %252 = arith.mulf %250, %251 : vector<16x32xf32>
    %253 = vector.broadcast %160 : vector<1x32xf32> to vector<16x32xf32>
    %254 = arith.addf %252, %253 : vector<16x32xf32>
    %cst_73 = arith.constant dense<0.000000e+00> : vector<16x128xf32>
    %255 = tpu.matmul %254, %165, %cst_73 {dimension_numbers = #tpu.dot_dimension_numbers<[1], [0], [0], [1], [0, 0, 1, 1], [], []>} : vector<16x32xf32>, vector<32x128xf32>, vector<16x128xf32> -> vector<16x128xf32>
    %256 = vector.broadcast %162 : vector<1x128xf32> to vector<16x128xf32>
    %257 = arith.addf %255, %256 : vector<16x128xf32>
    %258 = vector.extract_strided_slice %257 {offsets = [0, 0], sizes = [16, 64], strides = [1, 1]} : vector<16x128xf32> to vector<16x64xf32>
    %cst_74 = arith.constant dense<0.000000e+00> : vector<16x32xf32>
    %259 = tpu.matmul %258, %166, %cst_74 {dimension_numbers = #tpu.dot_dimension_numbers<[1], [0], [0], [1], [0, 0, 1, 1], [], []>} : vector<16x64xf32>, vector<64x32xf32>, vector<16x32xf32> -> vector<16x32xf32>
    %260 = vector.broadcast %163 : vector<1x32xf32> to vector<16x32xf32>
    %261 = arith.addf %259, %260 : vector<16x32xf32>
    %cst_75 = arith.constant 5.000000e-01 : f32
    %262 = vector.broadcast %cst_75 : f32 to vector<16x32xf32>
    %263 = arith.mulf %262, %261 : vector<16x32xf32>
    %cst_76 = arith.constant 0.707106769 : f32
    %264 = vector.broadcast %cst_76 : f32 to vector<16x32xf32>
    %265 = arith.mulf %261, %264 : vector<16x32xf32>
    %cst_77 = arith.constant 0.000000e+00 : f32
    %266 = vector.broadcast %cst_77 : f32 to vector<16x32xf32>
    %267 = arith.cmpf olt, %265, %266 : vector<16x32xf32>
    %cst_78 = arith.constant -1.000000e+00 : f32
    %cst_79 = arith.constant 1.000000e+00 : f32
    %268 = vector.broadcast %cst_78 : f32 to vector<16x32xf32>
    %269 = vector.broadcast %cst_79 : f32 to vector<16x32xf32>
    %270 = arith.select %267, %268, %269 : vector<16x32xi1>, vector<16x32xf32>
    %271 = math.absf %265 : vector<16x32xf32>
    %cst_80 = arith.constant 0.327591091 : f32
    %272 = vector.broadcast %cst_80 : f32 to vector<16x32xf32>
    %273 = arith.mulf %272, %271 : vector<16x32xf32>
    %cst_81 = arith.constant 1.000000e+00 : f32
    %274 = vector.broadcast %cst_81 : f32 to vector<16x32xf32>
    %275 = arith.addf %274, %273 : vector<16x32xf32>
    %cst_82 = arith.constant 1.000000e+00 : f32
    %276 = vector.broadcast %cst_82 : f32 to vector<16x32xf32>
    %277 = arith.divf %276, %275 : vector<16x32xf32>
    %cst_83 = arith.constant 1.06140542 : f32
    %278 = vector.broadcast %cst_83 : f32 to vector<16x32xf32>
    %279 = arith.mulf %278, %277 : vector<16x32xf32>
    %cst_84 = arith.constant -1.45315206 : f32
    %280 = vector.broadcast %cst_84 : f32 to vector<16x32xf32>
    %281 = arith.addf %279, %280 : vector<16x32xf32>
    %282 = arith.mulf %281, %277 : vector<16x32xf32>
    %cst_85 = arith.constant 1.42141378 : f32
    %283 = vector.broadcast %cst_85 : f32 to vector<16x32xf32>
    %284 = arith.addf %282, %283 : vector<16x32xf32>
    %285 = arith.mulf %284, %277 : vector<16x32xf32>
    %cst_86 = arith.constant -0.284496725 : f32
    %286 = vector.broadcast %cst_86 : f32 to vector<16x32xf32>
    %287 = arith.addf %285, %286 : vector<16x32xf32>
    %288 = arith.mulf %287, %277 : vector<16x32xf32>
    %cst_87 = arith.constant 0.254829586 : f32
    %289 = vector.broadcast %cst_87 : f32 to vector<16x32xf32>
    %290 = arith.addf %288, %289 : vector<16x32xf32>
    %291 = arith.mulf %290, %277 : vector<16x32xf32>
    %cst_88 = arith.constant 0.000000e+00 : f32
    %292 = vector.broadcast %cst_88 : f32 to vector<16x32xf32>
    %293 = arith.subf %292, %271 : vector<16x32xf32>
    %294 = arith.mulf %293, %271 : vector<16x32xf32>
    %295 = math.exp %294 : vector<16x32xf32>
    %296 = arith.mulf %291, %295 : vector<16x32xf32>
    %cst_89 = arith.constant 1.000000e+00 : f32
    %297 = vector.broadcast %cst_89 : f32 to vector<16x32xf32>
    %298 = arith.subf %297, %296 : vector<16x32xf32>
    %299 = arith.mulf %270, %298 : vector<16x32xf32>
    %cst_90 = arith.constant 1.000000e+00 : f32
    %300 = vector.broadcast %cst_90 : f32 to vector<16x32xf32>
    %301 = arith.addf %300, %299 : vector<16x32xf32>
    %302 = arith.mulf %263, %301 : vector<16x32xf32>
    %303 = arith.addf %302, %254 : vector<16x32xf32>
    %c272 = arith.constant 272 : index
    %c0_91 = arith.constant 0 : index
    %304 = vector.load %arg2[%c272, %c0_91] : memref<280x128xf32, #tpu.memory_space<vmem>>, vector<1x32xf32>
    %c273 = arith.constant 273 : index
    %c0_92 = arith.constant 0 : index
    %305 = vector.load %arg2[%c273, %c0_92] : memref<280x128xf32, #tpu.memory_space<vmem>>, vector<1x32xf32>
    %cst_93 = arith.constant dense<0.000000e+00> : vector<16xf32>
    %306 = vector.multi_reduction <add>, %303, %cst_93 [1] : vector<16x32xf32> to vector<16xf32>
    %307 = vector.shape_cast %306 : vector<16xf32> to vector<16x1xf32>
    %cst_94 = arith.constant 3.200000e+01 : f32
    %308 = vector.broadcast %cst_94 : f32 to vector<16x1xf32>
    %309 = arith.divf %307, %308 : vector<16x1xf32>
    %310 = vector.broadcast %309 : vector<16x1xf32> to vector<16x32xf32>
    %311 = arith.subf %303, %310 : vector<16x32xf32>
    %312 = arith.mulf %311, %311 : vector<16x32xf32>
    %cst_95 = arith.constant dense<0.000000e+00> : vector<16xf32>
    %313 = vector.multi_reduction <add>, %312, %cst_95 [1] : vector<16x32xf32> to vector<16xf32>
    %314 = vector.shape_cast %313 : vector<16xf32> to vector<16x1xf32>
    %cst_96 = arith.constant 3.200000e+01 : f32
    %315 = vector.broadcast %cst_96 : f32 to vector<16x1xf32>
    %316 = arith.divf %314, %315 : vector<16x1xf32>
    %317 = vector.broadcast %309 : vector<16x1xf32> to vector<16x32xf32>
    %318 = arith.subf %303, %317 : vector<16x32xf32>
    %cst_97 = arith.constant 9.99999974E-6 : f32
    %319 = vector.broadcast %cst_97 : f32 to vector<16x1xf32>
    %320 = arith.addf %316, %319 : vector<16x1xf32>
    %321 = math.rsqrt %320 : vector<16x1xf32>
    %322 = vector.broadcast %321 : vector<16x1xf32> to vector<16x32xf32>
    %323 = arith.mulf %318, %322 : vector<16x32xf32>
    %324 = vector.broadcast %304 : vector<1x32xf32> to vector<16x32xf32>
    %325 = arith.mulf %323, %324 : vector<16x32xf32>
    %326 = vector.broadcast %305 : vector<1x32xf32> to vector<16x32xf32>
    %327 = arith.addf %325, %326 : vector<16x32xf32>
    %cst_98 = arith.constant 0.000000e+00 : f32
    %328 = vector.broadcast %cst_98 : f32 to vector<16x96xf32>
    %329 = tpu.concatenate %327, %328 in 1 : vector<16x32xf32>, vector<16x96xf32> -> vector<16x128xf32>
    %c0_99 = arith.constant 0 : index
    %c0_100 = arith.constant 0 : index
    %330 = vector.load %arg3[%c0_99, %c0_100] : memref<16x128xf32, #tpu.memory_space<vmem>>, vector<16x128xf32>
    tpu.vector_store %arg3[%c0_99, %c0_100], %329 {strides = array<i32>} : memref<16x128xf32, #tpu.memory_space<vmem>>, vector<16x128xf32>,
    return
  }
}

</mosaic_0001>

<bundles_post_ra>
// kernel: encoder_forward.1
= control target key start
LH: loop header
LB: loop body
LE: loop exit
PB: predicated region body
PF: predicated region fallthrough
CT: control target
= control target key end

     0   :  { %8 = vsyncpa [#allocation3], 0  ;;  %s4838_s0 = inlined_call_operand.hbm [shape: f32[16,32], index: 0, kind: input, shape index: {}]   ;;  %s4839_s1 = inlined_call_operand.vmem [shape: f32[2,8], index: 1, kind: input, shape index: {}]   ;;  %s4840_s2 = inlined_call_operand.hbm [shape: f32[280,128], index: 2, kind: input, shape index: {}]   ;;  %s4841_s3 = inlined_call_operand.vmem [shape: f32[16,128], index: 3, kind: output, shape index: {}]  }
   0x1   :  { %9 = vsyncpa [#allocation5], 0  ;;  %s4310_s12 = smov [#allocation2]   ;;  %s4262_s16 = scalar_lea.hbm %s4838_s0, 256 }
   0x2   :  { %s15_s13 = sshll.u32 %s4310_s12, 4  ;;  %p4263_p0 = scmp.ne.s32.totalorder %s4838_s0, %s4262_s16  ;;  %s16_s13 = int_to_ptr.vmem [resolvable:$true] %s15_s13 }
   0x3   :  { %p4266_p1 = scmp.lt.u32.totalorder %s4262_s16, %s4838_s0 }
   0x5   :  { %p4268_p2 = pnand %p4266_p1, %p4263_p0 }
   0x7   :  { %4271 = shalt.err (!%p4268_p2)
}
   0x8   :  { %s4272_s21 = scalar_lea.vmem %s16_s13, 256  ;;  %p4277_p4 = scmp.lt.s32.totalorder %s16_s13, %s16_s13 }
   0x9   :  { %p4273_p3 = scmp.ne.s32.totalorder %s16_s13, %s4272_s21  ;;  %p4278_p5 = scmp.lt.s32.totalorder %s4272_s21, %s4272_s21 }
   0xb   :  { %p4279_p6 = por %p4278_p5, %p4277_p4 }
   0xd   :  { %p4280_p7 = pnand %p4279_p6, %p4273_p3 }
   0xf   :  { %4283 = shalt.err (!%p4280_p7)
}
  0x10   :  { %s4311_s22 = smov 128   ;;  %s4312_s23 = smov 8  }
  0x11   :  { %21 = dma.hbm_to_vmem [thread:$0]  %s4838_s0, 256, %s16_s13, [#allocation3], %s4311_s22, %s4311_s22, %s4312_s23  }
  0x12   :  { %s4313_s26 = smov [#allocation4]   ;;  %s4284_s30 = scalar_lea.hbm %s4840_s2, 4480 }
  0x13   :  { %s29_s27 = sshll.u32 %s4313_s26, 4  ;;  %p4285_p8 = scmp.ne.s32.totalorder %s4840_s2, %s4284_s30  ;;  %s30_s27 = int_to_ptr.vmem [resolvable:$true] %s29_s27 }
  0x14   :  { %p4288_p9 = scmp.lt.u32.totalorder %s4284_s30, %s4840_s2 }
  0x16   :  { %p4290_p10 = pnand %p4288_p9, %p4285_p8 }
  0x18   :  { %4293 = shalt.err (!%p4290_p10)
}
  0x19   :  { %s4294_s8 = scalar_lea.vmem %s30_s27, 4480  ;;  %p4299_p12 = scmp.lt.s32.totalorder %s30_s27, %s30_s27 }
  0x1a   :  { %p4295_p11 = scmp.ne.s32.totalorder %s30_s27, %s4294_s8  ;;  %p4300_p13 = scmp.lt.s32.totalorder %s4294_s8, %s4294_s8 }
  0x1c   :  { %p4301_p0 = por %p4300_p13, %p4299_p12 }
  0x1e   :  { %p4302_p1 = pnand %p4301_p0, %p4295_p11 }
  0x20   :  { %4305 = shalt.err (!%p4302_p1)
}
  0x21   :  { %35 = dma.hbm_to_vmem [thread:$0]  %s4840_s2, 4480, %s30_s27, [#allocation5], %s4311_s22, %s4311_s22, %s4312_s23  }
  0x22   :  { %4306 = dma.done.wait [#allocation3], 256  }
  0x23   :  { %4307 = vsyncadd [#allocation3], 4294967040 }
  0x24   :  { %4308 = dma.done.wait [#allocation5], 4480  }
  0x25   :  { %4309 = vsyncadd [#allocation5], 4294962816  ;;  %vm103_vm0 = vcmask 261120   ;;  %v42_v0 = vld [vmem:[#allocation2] sm:$0xff]  ;;  %v43_v1 = vld [vmem:[#allocation2 + $0x8] sm:$0xff]  ;;  %v4314_v37 = vmov 0.0   ;;  %v51_v58 = vlaneseq }
  0x26   :  { %v104_v2 = vsel %vm103_vm0, %v42_v0, 0.0  ;;  %v107_v3 = vsel %vm103_vm0, %v43_v1, 0.0  ;;  %v87_v14 = vld [vmem:[#allocation4 + $0x8] sm:$0xff]  ;;  %v88_v15 = vld [vmem:[#allocation4 + $0x10] sm:$0xff]  ;;  %v89_v16 = vld [vmem:[#allocation4 + $0x18] sm:$0xff]  ;;  %3857 = vmatprep.subr.mxu1 %v4314_v37  ;;  %vm4315_vm1 = vmmov 0  }
  0x27   :  { %105 = vadd.xlane.f32.xlu0 %v104_v2  ;;  %v4083_v17 = vpack.c.bf16 %v88_v15, %v87_v14  ;;  %v90_v18 = vld [vmem:[#allocation4 + $0x20] sm:$0xff]  ;;  %3859 = vmatprep.mubr.msk.f32.mxu1 %vm4315_vm1, %v4314_v37  ;;  %s4316_s2 = smov 120   ;;  %s4317_s10 = smov 112   ;;  %vm244_vm2 = vcmask 64512   ;;  %v4320_v56 = vmov 1966171168  }
  0x28   :  { %v4087_v19 = vpack.c.bf16 %v90_v18, %v89_v16  ;;  %v3657_v27 = vld [vmem:[#allocation4] ss:$0 sm:$0xff]  ;;  %v3658_v29 = vld [vmem:[#allocation4 + $0x1] ss:$0 sm:$0xff]  ;;  %v3659_v36 = vld [vmem:[#allocation4 + $0x4] ss:$0 sm:$0xff]  ;;  %v49_v57 = vunpack.c.l.s4 %v4320_v56 }
  0x29   :  { %4084 = vmatprep.subr.bf16.mxu0 %v4083_v17  ;;  %s4318_s11 = smov 104   ;;  %s4319_s12 = smov 96   ;;  %v44_v59 = vld [vmem:[%s4839_s1] sm:$0x3]  ;;  %v52_v62 = vshrl.u32 %v51_v58, 7  ;;  %vm1573_vm3 = vcmask 130048  }
  0x2a   :  { %4086 = vmatpush3.bf16.msra.mxu0 %v4083_v17  ;;  %v3656_v60 = vadd.f32 -1.0, %v44_v59  ;;  %v50_v61 = vunpack.c.0.s8 %v49_v57  ;;  %s4321_s1 = smov 64   ;;  %s4322_s15 = smov 16   ;;  %vm1576_vm4 = vcmask 195584   ;;  %vm1708_vm5 = vcmask 523264  }
  0x2b   :  { %108 = vadd.xlane.f32.xlu0 %v107_v3  ;;  %4088 = vmatprep.subr.bf16.mxu0 %v4087_v19  ;;  %v72_v3 = vsub.s32 0, %v52_v62  ;;  %s4323_s16 = smov 24  }
  0x2c   :  { %v46_v63 = vmul.f32 1e+30, %v3656_v60 }
  0x2e   :  { %4090 = vmatpush3.bf16.msra.mxu0 %v4087_v19 }
  0x2f   :  { %3852 = vmatprep.subr.mxu0 %v4314_v37 }
  0xb4   :  { %v106_v4 = vpop.xlane.xlu0 %105 }
  0xb5   :  { %v111_v5 = vmul.f32 0.03125, %v106_v4 }
  0xb7   :  { %v113_v6 = vsub.f32 %v42_v0, %v111_v5  ;;  %v53_v0 = vsub.s32 %v50_v61, %v52_v62 }
  0xb8   :  { %v109_v7 = vpop.xlane.xlu0 %108 }
  0xb9   :  { %v112_v8 = vmul.f32 0.03125, %v109_v7  ;;  %v115_v9 = vmul.f32 %v113_v6, %v113_v6 }
  0xbb   :  { %v114_v10 = vsub.f32 %v43_v1, %v112_v8  ;;  %v117_v11 = vsel %vm103_vm0, %v115_v9, 0.0  ;;  %v54_v1 = vrot.slane %v46_v63, %v53_v0 }
  0xbc   :  { %118 = vadd.xlane.f32.xlu1 %v117_v11 }
  0xbd   :  { %v116_v12 = vmul.f32 %v114_v10, %v114_v10  ;;  %v62_v2 = vrot.slane %v54_v1, %v53_v0  ;;  %v55_v4 = vcombine.high %v54_v1, %v54_v1 }
  0xbf   :  { %v120_v13 = vsel %vm103_vm0, %v116_v12, 0.0  ;;  %v4484_v5 = vrot.slane %v62_v2, %v72_v3  ;;  %v69_v7 = vrot.slane %v55_v4, %v53_v0 }
  0xc0   :  { %121 = vadd.xlane.f32.xlu1 %v120_v13 }
  0xc1   :  { %v4488_v11 = vrot.slane %v69_v7, %v72_v3 }
 0x149   :  { %v119_v20 = vpop.xlane.xlu1 %118 }
 0x14a   :  { %v123_v21 = vmul.f32 0.03125, %v119_v20 }
 0x14c   :  { %v125_v22 = vadd.f32 1e-05, %v123_v21 }
 0x14d   :  { %v122_v23 = vpop.xlane.xlu1 %121 }
 0x14e   :  { %4162 = vrsqrt.f32 %v125_v22  ;;  %v124_v24 = vmul.f32 0.03125, %v122_v23 }
 0x150   :  { %v126_v25 = vadd.f32 1e-05, %v124_v24 }
 0x152   :  { %4164 = vrsqrt.f32 %v126_v25 }
 0x158   :  { %v4163_v26 = vpop.eup %4162 }
 0x159   :  { %v129_v28 = vmul.f32 %v4163_v26, %v113_v6 }
 0x15b   :  { %v135_v30 = vmul.f32 %v3657_v27, %v129_v28 }
 0x15c   :  { %v4165_v31 = vpop.eup %4164 }
 0x15d   :  { %v130_v32 = vmul.f32 %v4165_v31, %v114_v10  ;;  %v4375_v33 = vadd.f32 %v3658_v29, %v135_v30 }
 0x15f   :  { %v136_v34 = vmul.f32 %v3657_v27, %v130_v32  ;;  %3849 = vmatprep.mubr.msk.f32.mxu0 %vm103_vm0, %v4375_v33 }
 0x161   :  { %v4379_v35 = vadd.f32 %v3658_v29, %v136_v34 }
 0x163   :  { %3850 = vmatmul.mubr.msk.f32.vlgmr.msra.gmra.mrb[0].mxu0 %vm103_vm0, %v4379_v35 }
 0x164   :  { %3854 = vmatprep.mubr.msk.f32.mxu0 %vm4315_vm1, %v4314_v37 }
 0x236   :  { %v3851_v38 = vpop.f32.mrb[0].mxu0 }
 0x237   :  { %v4389_v39 = vadd.f32 %v3851_v38, %v3659_v36  ;;  %v219_v40 = vpop.f32.mrb[1].mxu0 }
 0x238   :  { %v4391_v41 = vadd.f32 %v3659_v36, %v219_v40 }
 0x239   :  { %232 = vrot.lane.b32.xlu1 %v4389_v39, %s4316_s2 }
 0x23a   :  { %230 = vrot.lane.b32.xlu0 %v4391_v41, %s4316_s2 }
 0x23d   :  { %234 = vrot.lane.b32.xlu1 %v4391_v41, %s4317_s10 }
 0x23e   :  { %238 = vrot.lane.b32.xlu0 %v4391_v41, %s4318_s11 }
 0x241   :  { %236 = vrot.lane.b32.xlu1 %v4389_v39, %s4317_s10 }
 0x242   :  { %242 = vrot.lane.b32.xlu0 %v4391_v41, %s4319_s12 }
 0x245   :  { %240 = vrot.lane.b32.xlu1 %v4389_v39, %s4318_s11 }
 0x249   :  { %319 = vrot.lane.b32.xlu1 %v4389_v39, %s4319_s12 }
 0x2ab   :  { %v4409_v42 = vpop.permute.xlu1 %232 }
 0x2ac   :  { %471 = vrot.lane.b32.xlu1 %v4409_v42, %s4319_s12  ;;  %v4413_v43 = vpop.permute.xlu0 %230 }
 0x2ad   :  { %395 = vrot.lane.b32.xlu0 %v4413_v43, %s4319_s12 }
 0x2af   :  { %v4417_v44 = vpop.permute.xlu1 %234 }
 0x2b0   :  { %v4419_v45 = vpop.permute.xlu0 %238 }
 0x2b1   :  { %547 = vrot.lane.b32.xlu0 %v4417_v44, %s4319_s12 }
 0x2b3   :  { %v4423_v46 = vpop.permute.xlu1 %236 }
 0x2b4   :  { %623 = vrot.lane.b32.xlu1 %v4423_v46, %s4319_s12  ;;  %v243_v47 = vpop.permute.xlu0 %242 }
 0x2b5   :  { %699 = vrot.lane.b32.xlu0 %v4419_v45, %s4319_s12  ;;  %3853 = vmatpush3.xpose.msk.msra.mxu0 %vm244_vm2, %v243_v47 }
 0x2b6   :  { %3862 = vmatprep.subr.mxu0 %v4314_v37 }
 0x2b7   :  { %v4431_v48 = vpop.permute.xlu1 %240 }
 0x2b8   :  { %775 = vrot.lane.b32.xlu1 %v4431_v48, %s4319_s12  ;;  %3855 = vmatmul.mubr.msk.f32.vlgmr.msra.gmra.mrb[2].mxu0 %vm244_vm2, %v4391_v41 }
 0x2b9   :  { %3864 = vmatprep.mubr.msk.f32.mxu0 %vm4315_vm1, %v4314_v37 }
 0x2bb   :  { %v320_v49 = vpop.permute.xlu1 %319 }
 0x2bc   :  { %3858 = vmatpush3.xpose.msk.msra.mxu1 %vm244_vm2, %v320_v49 }
 0x2bd   :  { %3867 = vmatprep.subr.mxu1 %v4314_v37 }
 0x2bf   :  { %3860 = vmatmul.mubr.msk.f32.vlgmr.msra.gmra.mrb[0].mxu1 %vm244_vm2, %v4389_v39 }
 0x2c0   :  { %3869 = vmatprep.mubr.msk.f32.mxu1 %vm4315_vm1, %v4314_v37 }
 0x31e   :  { %v472_v50 = vpop.permute.xlu1 %471 }
 0x31f   :  { %3868 = vmatpush3.xpose.msk.msra.mxu1 %vm244_vm2, %v472_v50  ;;  %v396_v51 = vpop.permute.xlu0 %395 }
 0x320   :  { %3863 = vmatpush3.xpose.msk.msra.mxu0 %vm244_vm2, %v396_v51  ;;  %3877 = vmatprep.subr.mxu1 %v4314_v37 }
 0x321   :  { %3872 = vmatprep.subr.mxu0 %v4314_v37 }
 0x322   :  { %3870 = vmatmul.mubr.msk.f32.vlgmr.msra.gmra.mrb[2].mxu1 %vm244_vm2, %v4409_v42 }
 0x323   :  { %3865 = vmatmul.mubr.msk.f32.vlgmr.msra.gmra.mrb[4].mxu0 %vm244_vm2, %v4413_v43  ;;  %v548_v52 = vpop.permute.xlu0 %547  ;;  %3879 = vmatprep.mubr.msk.f32.mxu1 %vm4315_vm1, %v4314_v37 }
 0x324   :  { %3873 = vmatpush3.xpose.msk.msra.mxu0 %vm244_vm2, %v548_v52  ;;  %3874 = vmatprep.mubr.msk.f32.mxu0 %vm4315_vm1, %v4314_v37 }
 0x325   :  { %3882 = vmatprep.subr.mxu0 %v4314_v37 }
 0x326   :  { %v624_v53 = vpop.permute.xlu1 %623 }
 0x327   :  { %3875 = vmatmul.mubr.msk.f32.vlgmr.msra.gmra.mrb[6].mxu0 %vm244_vm2, %v4417_v44  ;;  %3878 = vmatpush3.xpose.msk.msra.mxu1 %vm244_vm2, %v624_v53  ;;  %v700_v54 = vpop.permute.xlu0 %699 }
 0x328   :  { %3883 = vmatpush3.xpose.msk.msra.mxu0 %vm244_vm2, %v700_v54  ;;  %3887 = vmatprep.subr.mxu1 %v4314_v37 }
 0x329   :  { %3884 = vmatprep.mubr.msk.f32.mxu0 %vm4315_vm1, %v4314_v37  ;;  %3892 = vmatprep.subr.mxu0 %v4314_v37 }
 0x32a   :  { %3880 = vmatmul.mubr.msk.f32.vlgmr.msra.gmra.mrb[4].mxu1 %vm244_vm2, %v4423_v46  ;;  %v776_v55 = vpop.permute.xlu1 %775 }
 0x32b   :  { %3885 = vmatmul.mubr.msk.f32.vlgmr.msra.gmra.mrb[8].mxu0 %vm244_vm2, %v4419_v45  ;;  %3888 = vmatpush3.xpose.msk.msra.mxu1 %vm244_vm2, %v776_v55 }
 0x32c   :  { %3889 = vmatprep.mubr.msk.f32.mxu1 %vm4315_vm1, %v4314_v37  ;;  %3897 = vmatprep.subr.mxu1 %v4314_v37 }
 0x32d   :  { %3894 = vmatprep.mubr.msk.f32.mxu0 %vm4315_vm1, %v4314_v37 }
 0x32e   :  { %3890 = vmatmul.mubr.msk.f32.vlgmr.msra.gmra.mrb[6].mxu1 %vm244_vm2, %v4431_v48 }
 0x32f   :  { %3899 = vmatprep.mubr.msk.f32.mxu1 %vm4315_vm1, %v4314_v37 }
 0x38b   :  { %v315_v6 = vpop.f32.mrb[2].mxu0 }
 0x38c   :  { %v316_v8 = vadd.f32 %v315_v6, %v4484_v5  ;;  %v3856_v9 = vpop.f32.mrb[3].mxu0 }
 0x38e   :  { %v851_v10 = vsel %vm244_vm2, %v316_v8, -inf }
 0x38f   :  { %852 = vmax.xlane.f32.xlu0 %v851_v10 }
 0x392   :  { %v391_v12 = vpop.f32.mrb[0].mxu1 }
 0x393   :  { %v392_v13 = vadd.f32 %v391_v12, %v4488_v11  ;;  %v3861_v14 = vpop.f32.mrb[1].mxu1 }
 0x395   :  { %v854_v15 = vsel %vm244_vm2, %v392_v13, -inf }
 0x396   :  { %855 = vmax.xlane.f32.xlu1 %v854_v15 }
 0x3f5   :  { %v543_v16 = vpop.f32.mrb[2].mxu1 }
 0x3f6   :  { %v544_v17 = vadd.f32 %v543_v16, %v4488_v11  ;;  %v467_v18 = vpop.f32.mrb[4].mxu0  ;;  %v3871_v19 = vpop.f32.mrb[3].mxu1 }
 0x3f7   :  { %v3866_v20 = vpop.f32.mrb[5].mxu0  ;;  %v468_v21 = vadd.f32 %v467_v18, %v4484_v5 }
 0x3f8   :  { %v860_v22 = vsel %vm244_vm2, %v544_v17, -inf }
 0x3f9   :  { %861 = vmax.xlane.f32.xlu0 %v860_v22  ;;  %v857_v26 = vsel %vm244_vm2, %v468_v21, -inf }
 0x3fa   :  { %v619_v23 = vpop.f32.mrb[6].mxu0 }
 0x3fb   :  { %v3876_v24 = vpop.f32.mrb[7].mxu0  ;;  %v620_v25 = vadd.f32 %v619_v23, %v4484_v5 }
 0x3fd   :  { %v695_v27 = vpop.f32.mrb[4].mxu1  ;;  %858 = vmax.xlane.f32.xlu0 %v857_v26  ;;  %v863_v36 = vsel %vm244_vm2, %v620_v25, -inf }
 0x3fe   :  { %v696_v28 = vadd.f32 %v695_v27, %v4488_v11  ;;  %v3881_v29 = vpop.f32.mrb[5].mxu1  ;;  %v771_v30 = vpop.f32.mrb[8].mxu0 }
 0x3ff   :  { %v3886_v31 = vpop.f32.mrb[9].mxu0  ;;  %v772_v32 = vadd.f32 %v771_v30, %v4484_v5 }
 0x400   :  { %v866_v34 = vsel %vm244_vm2, %v696_v28, -inf }
 0x401   :  { %867 = vmax.xlane.f32.xlu1 %v866_v34  ;;  %v847_v38 = vpop.f32.mrb[6].mxu1  ;;  %864 = vmax.xlane.f32.xlu0 %v863_v36  ;;  %v869_v50 = vsel %vm244_vm2, %v772_v32, -inf }
 0x402   :  { %v848_v40 = vadd.f32 %v847_v38, %v4488_v11  ;;  %v3891_v47 = vpop.f32.mrb[7].mxu1 }
 0x404   :  { %v872_v49 = vsel %vm244_vm2, %v848_v40, -inf }
 0x405   :  { %873 = vmax.xlane.f32.xlu1 %v872_v49  ;;  %870 = vmax.xlane.f32.xlu0 %v869_v50 }
 0x416   :  { %1015 = vrot.lane.b32.xlu1 %v4389_v39, %s4321_s1 }
 0x41a   :  { %1091 = vrot.lane.b32.xlu1 %v4413_v43, %s4321_s1 }
 0x41b   :  { %939 = vrot.lane.b32.xlu0 %v4391_v41, %s4321_s1 }
 0x41c   :  { %v853_v51 = vpop.xlane.xlu0 %852 }
 0x41d   :  { %v875_v52 = vsub.f32 %v316_v8, %v853_v51 }
 0x41e   :  { %1167 = vrot.lane.b32.xlu1 %v4409_v42, %s4321_s1 }
 0x41f   :  { %1243 = vrot.lane.b32.xlu0 %v4417_v44, %s4321_s1  ;;  %v883_v53 = vmul.f32 1.442695, %v875_v52 }
 0x421   :  { %4166 = vpow2.f32 %v883_v53 }
 0x422   :  { %1319 = vrot.lane.b32.xlu1 %v4423_v46, %s4321_s1 }
 0x423   :  { %v856_v54 = vpop.xlane.xlu1 %855 }
 0x424   :  { %v876_v39 = vsub.f32 %v392_v13, %v856_v54 }
 0x426   :  { %v885_v55 = vmul.f32 1.442695, %v876_v39 }
 0x428   :  { %4168 = vpow2.f32 %v885_v55 }
 0x42b   :  { %v4516_v43 = vpop.eup %4166 }
 0x42c   :  { %v899_v41 = vsel %vm244_vm2, %v4516_v43, 0.0 }
 0x432   :  { %v4520_v42 = vpop.eup %4168 }
 0x433   :  { %v902_v44 = vsel %vm244_vm2, %v4520_v42, 0.0 }
 0x43e   :  { %900 = vadd.xlane.f32.xlu0 %v899_v41 }
 0x446   :  { %903 = vadd.xlane.f32.xlu1 %v902_v44 }
 0x486   :  { %v862_v46 = vpop.xlane.xlu0 %861 }
 0x487   :  { %v878_v56 = vsub.f32 %v544_v17, %v862_v46 }
 0x489   :  { %v889_v57 = vmul.f32 1.442695, %v878_v56 }
 0x48a   :  { %v859_v58 = vpop.xlane.xlu0 %858 }
 0x48b   :  { %4170 = vpow2.f32 %v889_v57  ;;  %v877_v59 = vsub.f32 %v468_v21, %v859_v58 }
 0x48d   :  { %v887_v60 = vmul.f32 1.442695, %v877_v59 }
 0x48e   :  { %v868_v61 = vpop.xlane.xlu1 %867  ;;  %v865_v62 = vpop.xlane.xlu0 %864 }
 0x48f   :  { %4172 = vpow2.f32 %v887_v60  ;;  %v880_v63 = vsub.f32 %v696_v28, %v868_v61  ;;  %v879_v0 = vsub.f32 %v620_v25, %v865_v62 }
 0x491   :  { %v893_v1 = vmul.f32 1.442695, %v880_v63  ;;  %v891_v2 = vmul.f32 1.442695, %v879_v0 }
 0x492   :  { %v874_v3 = vpop.xlane.xlu1 %873  ;;  %v871_v4 = vpop.xlane.xlu0 %870 }
 0x493   :  { %4174 = vpow2.f32 %v893_v1  ;;  %v882_v6 = vsub.f32 %v848_v40, %v874_v3  ;;  %v881_v7 = vsub.f32 %v772_v32, %v871_v4 }
 0x494   :  { %4176 = vpow2.f32 %v891_v2 }
 0x495   :  { %v4171_v8 = vpop.eup %4170  ;;  %v897_v9 = vmul.f32 1.442695, %v882_v6  ;;  %v895_v10 = vmul.f32 1.442695, %v881_v7 }
 0x496   :  { %v1016_v12 = vpop.permute.xlu1 %1015  ;;  %v940_v13 = vpop.permute.xlu0 %939  ;;  %v908_v14 = vsel %vm244_vm2, %v4171_v8, 0.0 }
 0x497   :  { %4178 = vpow2.f32 %v897_v9  ;;  %3898 = vmatpush3.msra.mxu1 %v1016_v12  ;;  %909 = vadd.xlane.f32.xlu1 %v908_v14 }
 0x498   :  { %4180 = vpow2.f32 %v895_v10  ;;  %3893 = vmatpush3.msra.mxu0 %v940_v13  ;;  %3907 = vmatprep.subr.mxu1 %v4314_v37 }
 0x499   :  { %v4173_v15 = vpop.eup %4172  ;;  %3902 = vmatprep.subr.mxu0 %v4314_v37 }
 0x49a   :  { %v905_v16 = vsel %vm244_vm2, %v4173_v15, 0.0  ;;  %v1092_v25 = vpop.permute.xlu1 %1091  ;;  %v1244_v26 = vpop.permute.xlu0 %1243 }
 0x49b   :  { %906 = vadd.xlane.f32.xlu0 %v905_v16 }
 0x49d   :  { %v4175_v17 = vpop.eup %4174 }
 0x49e   :  { %v4177_v18 = vpop.eup %4176  ;;  %v914_v19 = vsel %vm244_vm2, %v4175_v17, 0.0  ;;  %v1168_v27 = vpop.permute.xlu1 %1167 }
 0x49f   :  { %915 = vadd.xlane.f32.xlu1 %v914_v19  ;;  %v911_v20 = vsel %vm244_vm2, %v4177_v18, 0.0 }
 0x4a0   :  { %912 = vadd.xlane.f32.xlu0 %v911_v20 }
 0x4a1   :  { %v4530_v21 = vpop.eup %4178 }
 0x4a2   :  { %v4532_v22 = vpop.eup %4180  ;;  %v920_v23 = vsel %vm244_vm2, %v4530_v21, 0.0  ;;  %v1320_v29 = vpop.permute.xlu1 %1319 }
 0x4a3   :  { %921 = vadd.xlane.f32.xlu1 %v920_v23  ;;  %v917_v24 = vsel %vm244_vm2, %v4532_v22, 0.0 }
 0x4a4   :  { %918 = vadd.xlane.f32.xlu0 %v917_v24 }
 0x4b4   :  { %1471 = vrot.lane.b32.xlu1 %v4431_v48, %s4321_s1 }
 0x4ba   :  { %1395 = vrot.lane.b32.xlu0 %v4419_v45, %s4321_s1 }
 0x4cb   :  { %v901_v28 = vpop.xlane.xlu0 %900 }
 0x4cc   :  { %4182 = vrcp.f32 %v901_v28 }
 0x4d3   :  { %v904_v30 = vpop.xlane.xlu1 %903 }
 0x4d4   :  { %4184 = vrcp.f32 %v904_v30 }
 0x4d6   :  { %v4183_v31 = vpop.eup %4182 }
 0x4d7   :  { %v931_v32 = vmul.f32 %v4183_v31, %v4516_v43 }
 0x4d9   :  { %3895 = vmatmul.mubr.msk.f32.vlgmr.msra.gmra.mrb[10].mxu0 %vm244_vm2, %v931_v32 }
 0x4da   :  { %3903 = vmatpush3.msra.mxu0 %v1092_v25  ;;  %3904 = vmatprep.mubr.msk.f32.mxu0 %vm4315_vm1, %v4314_v37 }
 0x4db   :  { %3912 = vmatprep.subr.mxu0 %v4314_v37 }
 0x4de   :  { %v4185_v45 = vpop.eup %4184 }
 0x4df   :  { %v932_v48 = vmul.f32 %v4185_v45, %v4520_v42 }
 0x4e1   :  { %3900 = vmatmul.mubr.msk.f32.vlgmr.msra.gmra.mrb[8].mxu1 %vm244_vm2, %v932_v48 }
 0x4e2   :  { %3908 = vmatpush3.msra.mxu1 %v1168_v27  ;;  %3909 = vmatprep.mubr.msk.f32.mxu1 %vm4315_vm1, %v4314_v37 }
 0x4e3   :  { %3917 = vmatprep.subr.mxu1 %v4314_v37 }
 0x524   :  { %v910_v34 = vpop.xlane.xlu1 %909 }
 0x525   :  { %4186 = vrcp.f32 %v910_v34 }
 0x528   :  { %v907_v36 = vpop.xlane.xlu0 %906 }
 0x529   :  { %4188 = vrcp.f32 %v907_v36 }
 0x52c   :  { %v916_v38 = vpop.xlane.xlu1 %915 }
 0x52d   :  { %4190 = vrcp.f32 %v916_v38  ;;  %v913_v40 = vpop.xlane.xlu0 %912  ;;  %v92_v38 = vld [vmem:[#allocation4 + $0x30] sm:$0xff] }
 0x52e   :  { %4192 = vrcp.f32 %v913_v40 }
 0x52f   :  { %v4187_v47 = vpop.eup %4186 }
 0x530   :  { %v934_v49 = vmul.f32 %v4187_v47, %v4171_v8  ;;  %v922_v50 = vpop.xlane.xlu1 %921  ;;  %v93_v47 = vld [vmem:[#allocation4 + $0x38] sm:$0xff] }
 0x531   :  { %4194 = vrcp.f32 %v922_v50  ;;  %v919_v51 = vpop.xlane.xlu0 %918 }
 0x532   :  { %4196 = vrcp.f32 %v919_v51  ;;  %3910 = vmatmul.mubr.msk.f32.vlgmr.msra.gmra.mrb[10].mxu1 %vm244_vm2, %v934_v49  ;;  %v94_v49 = vld [vmem:[#allocation4 + $0x40] sm:$0xff]  ;;  %v95_v51 = vld [vmem:[#allocation4 + $0x48] sm:$0xff] }
 0x533   :  { %v4189_v52 = vpop.eup %4188  ;;  %3918 = vmatpush3.msra.mxu1 %v1320_v29  ;;  %3919 = vmatprep.mubr.msk.f32.mxu1 %vm4315_vm1, %v4314_v37  ;;  %v4095_v50 = vpack.c.bf16 %v94_v49, %v93_v47 }
 0x534   :  { %v933_v53 = vmul.f32 %v4189_v52, %v4173_v15  ;;  %3927 = vmatprep.subr.mxu1 %v4314_v37  ;;  %v1472_v41 = vpop.permute.xlu1 %1471  ;;  %v96_v52 = vld [vmem:[#allocation4 + $0x50] sm:$0xff] }
 0x535   :  { %v1396_v44 = vpop.permute.xlu0 %1395 }
 0x536   :  { %3905 = vmatmul.mubr.msk.f32.vlgmr.msra.gmra.mrb[12].mxu0 %vm244_vm2, %v933_v53  ;;  %v97_v53 = vld [vmem:[#allocation4 + $0x58] sm:$0xff] }
 0x537   :  { %v4191_v54 = vpop.eup %4190  ;;  %3913 = vmatpush3.msra.mxu0 %v1244_v26  ;;  %3914 = vmatprep.mubr.msk.f32.mxu0 %vm4315_vm1, %v4314_v37 }
 0x538   :  { %v4193_v39 = vpop.eup %4192  ;;  %v936_v55 = vmul.f32 %v4191_v54, %v4175_v17  ;;  %3922 = vmatprep.subr.mxu0 %v4314_v37  ;;  %v4099_v54 = vpack.c.bf16 %v96_v52, %v95_v51 }
 0x539   :  { %v935_v43 = vmul.f32 %v4193_v39, %v4177_v18  ;;  %v98_v39 = vld [vmem:[#allocation4 + $0x60] sm:$0xff] }
 0x53a   :  { %3920 = vmatmul.mubr.msk.f32.vlgmr.msra.gmra.mrb[12].mxu1 %vm244_vm2, %v936_v55  ;;  %v4103_v55 = vpack.c.bf16 %v98_v39, %v97_v53 }
 0x53b   :  { %v4195_v42 = vpop.eup %4194  ;;  %3915 = vmatmul.mubr.msk.f32.vlgmr.msra.gmra.mrb[14].mxu0 %vm244_vm2, %v935_v43  ;;  %3928 = vmatpush3.msra.mxu1 %v1472_v41  ;;  %v99_v43 = vld [vmem:[#allocation4 + $0x68] sm:$0xff]  ;;  %v100_v41 = vld [vmem:[#allocation4 + $0x70] sm:$0xff] }
 0x53c   :  { %v4197_v46 = vpop.eup %4196  ;;  %v938_v56 = vmul.f32 %v4195_v42, %v4530_v21  ;;  %3923 = vmatpush3.msra.mxu0 %v1396_v44  ;;  %3924 = vmatprep.mubr.msk.f32.mxu0 %vm4315_vm1, %v4314_v37  ;;  %v4107_v42 = vpack.c.bf16 %v100_v41, %v99_v43 }
 0x53d   :  { %v937_v57 = vmul.f32 %v4197_v46, %v4532_v22  ;;  %3929 = vmatprep.mubr.msk.f32.mxu1 %vm4315_vm1, %v4314_v37  ;;  %4100 = vmatprep.subr.bf16.mxu1 %v4099_v54 }
 0x53e   :  { %3930 = vmatmul.mubr.msk.f32.vlgmr.msra.gmra.mrb[14].mxu1 %vm244_vm2, %v938_v56 }
 0x53f   :  { %3925 = vmatmul.mubr.msk.f32.vlgmr.msra.gmra.mrb[16].mxu0 %vm244_vm2, %v937_v57  ;;  %4102 = vmatpush3.bf16.msra.mxu1 %v4099_v54 }
 0x540   :  { %4104 = vmatprep.subr.bf16.mxu1 %v4103_v55 }
 0x543   :  { %4106 = vmatpush3.bf16.msra.mxu1 %v4103_v55 }
 0x544   :  { %4108 = vmatprep.subr.bf16.mxu1 %v4107_v42 }
 0x547   :  { %4110 = vmatpush3.bf16.msra.mxu1 %v4107_v42 }
 0x5ac   :  { %v1011_v58 = vpop.f32.mrb[10].mxu0 }
 0x5ad   :  { %v3896_v59 = vpop.f32.mrb[11].mxu0 }
 0x5b4   :  { %v1087_v60 = vpop.f32.mrb[8].mxu1 }
 0x5b5   :  { %v3901_v61 = vpop.f32.mrb[9].mxu1 }
 0x5b6   :  { %v3686_v61 = vld [vmem:[#allocation4 + $0x2] ss:$0 sm:$0xff] }
 0x605   :  { %v1239_v62 = vpop.f32.mrb[10].mxu1 }
 0x606   :  { %1551 = vrot.lane.b32.xlu1 %v1239_v62, %s4312_s23  ;;  %v3911_v63 = vpop.f32.mrb[11].mxu1 }
 0x607   :  { %v3687_v63 = vld [vmem:[#allocation4 + $0x3] ss:$0 sm:$0xff] }
 0x609   :  { %v1163_v0 = vpop.f32.mrb[12].mxu0 }
 0x60a   :  { %1549 = vrot.lane.b32.xlu0 %v1163_v0, %s4312_s23  ;;  %v3906_v1 = vpop.f32.mrb[13].mxu0 }
 0x60d   :  { %v1391_v2 = vpop.f32.mrb[12].mxu1 }
 0x60e   :  { %v1315_v3 = vpop.f32.mrb[14].mxu0  ;;  %1559 = vrot.lane.b32.xlu1 %v1391_v2, %s4322_s15  ;;  %v3921_v4 = vpop.f32.mrb[13].mxu1 }
 0x60f   :  { %1557 = vrot.lane.b32.xlu0 %v1315_v3, %s4322_s15  ;;  %v3916_v6 = vpop.f32.mrb[15].mxu0 }
 0x611   :  { %v1543_v7 = vpop.f32.mrb[14].mxu1 }
 0x612   :  { %v1467_v8 = vpop.f32.mrb[16].mxu0  ;;  %1567 = vrot.lane.b32.xlu1 %v1543_v7, %s4323_s16  ;;  %v3931_v9 = vpop.f32.mrb[15].mxu1  ;;  %v101_v7 = vld [vmem:[#allocation4 + $0x78] sm:$0xff] }
 0x613   :  { %1565 = vrot.lane.b32.xlu0 %v1467_v8, %s4323_s16  ;;  %v3926_v10 = vpop.f32.mrb[17].mxu0  ;;  %v102_v8 = vld [vmem:[#allocation4 + $0x80] sm:$0xff] }
 0x614   :  { %v4111_v9 = vpack.c.bf16 %v102_v8, %v101_v7  ;;  %v3688_v10 = vld [vmem:[#allocation4 + $0x5] ss:$0 sm:$0xff] }
 0x616   :  { %4112 = vmatprep.subr.bf16.mxu1 %v4111_v9 }
 0x617   :  { %4114 = vmatpush3.bf16.msra.mxu1 %v4111_v9 }
 0x618   :  { %3978 = vmatprep.subr.mxu1 %v4314_v37 }
 0x678   :  { %v1552_v12 = vpop.permute.xlu1 %1551 }
 0x679   :  { %v1572_v16 = vsel %vm244_vm2, %v1087_v60, %v1552_v12 }
 0x67c   :  { %v1550_v13 = vpop.permute.xlu0 %1549 }
 0x67d   :  { %v1571_v17 = vsel %vm244_vm2, %v1011_v58, %v1550_v13 }
 0x680   :  { %v1560_v14 = vpop.permute.xlu1 %1559 }
 0x681   :  { %v1558_v15 = vpop.permute.xlu0 %1557  ;;  %v1575_v18 = vsel %vm1573_vm3, %v1572_v16, %v1560_v14  ;;  %v3691_v16 = vld [vmem:[#allocation4 + $0x6] ss:$0 sm:$0xff] }
 0x682   :  { %v1574_v20 = vsel %vm1573_vm3, %v1571_v17, %v1558_v15 }
 0x684   :  { %v1568_v19 = vpop.permute.xlu1 %1567 }
 0x685   :  { %v1578_v21 = vsel %vm1576_vm4, %v1575_v18, %v1568_v19  ;;  %v1566_v22 = vpop.permute.xlu0 %1565 }
 0x686   :  { %v1577_v23 = vsel %vm1576_vm4, %v1574_v20, %v1566_v22  ;;  %v1580_v24 = vadd.f32 %v1578_v21, %v4379_v35 }
 0x687   :  { %v1579_v25 = vadd.f32 %v1577_v23, %v4375_v33  ;;  %v91_v33 = vld [vmem:[#allocation4 + $0x28] sm:$0xff] }
 0x688   :  { %v1584_v26 = vsel %vm103_vm0, %v1580_v24, 0.0  ;;  %v4091_v40 = vpack.c.bf16 %v92_v38, %v91_v33 }
 0x689   :  { %1585 = vadd.xlane.f32.xlu1 %v1584_v26  ;;  %v1581_v27 = vsel %vm103_vm0, %v1579_v25, 0.0 }
 0x68a   :  { %1582 = vadd.xlane.f32.xlu0 %v1581_v27  ;;  %4092 = vmatprep.subr.bf16.mxu0 %v4091_v40 }
 0x68b   :  { %4094 = vmatpush3.bf16.msra.mxu0 %v4091_v40 }
 0x68c   :  { %4096 = vmatprep.subr.bf16.mxu0 %v4095_v50 }
 0x68f   :  { %4098 = vmatpush3.bf16.msra.mxu0 %v4095_v50 }
 0x716   :  { %v1586_v28 = vpop.xlane.xlu1 %1585 }
 0x717   :  { %v1588_v29 = vmul.f32 0.03125, %v1586_v28  ;;  %v1583_v30 = vpop.xlane.xlu0 %1582 }
 0x718   :  { %v1587_v31 = vmul.f32 0.03125, %v1583_v30 }
 0x719   :  { %v1590_v32 = vsub.f32 %v1580_v24, %v1588_v29 }
 0x71a   :  { %v1589_v45 = vsub.f32 %v1579_v25, %v1587_v31 }
 0x71b   :  { %v1592_v36 = vmul.f32 %v1590_v32, %v1590_v32 }
 0x71c   :  { %v1591_v48 = vmul.f32 %v1589_v45, %v1589_v45 }
 0x71d   :  { %v1596_v35 = vsel %vm103_vm0, %v1592_v36, 0.0 }
 0x71e   :  { %v1593_v34 = vsel %vm103_vm0, %v1591_v48, 0.0 }
 0x71f   :  { %1594 = vadd.xlane.f32.xlu0 %v1593_v34 }
 0x723   :  { %1597 = vadd.xlane.f32.xlu0 %v1596_v35 }
 0x7ac   :  { %v1595_v44 = vpop.xlane.xlu0 %1594 }
 0x7ad   :  { %v1599_v46 = vmul.f32 0.03125, %v1595_v44 }
 0x7af   :  { %v1601_v56 = vadd.f32 1e-05, %v1599_v46 }
 0x7b0   :  { %v1598_v57 = vpop.xlane.xlu0 %1597 }
 0x7b1   :  { %4198 = vrsqrt.f32 %v1601_v56  ;;  %v1600_v58 = vmul.f32 0.03125, %v1598_v57 }
 0x7b3   :  { %v1602_v59 = vadd.f32 1e-05, %v1600_v58 }
 0x7b5   :  { %4200 = vrsqrt.f32 %v1602_v59 }
 0x7bb   :  { %v4199_v60 = vpop.eup %4198 }
 0x7bc   :  { %v1605_v62 = vmul.f32 %v4199_v60, %v1589_v45 }
 0x7be   :  { %v1611_v0 = vmul.f32 %v3686_v61, %v1605_v62 }
 0x7bf   :  { %v4201_v1 = vpop.eup %4200 }
 0x7c0   :  { %v1606_v2 = vmul.f32 %v4201_v1, %v1590_v32  ;;  %v4588_v3 = vadd.f32 %v3687_v63, %v1611_v0 }
 0x7c2   :  { %v1612_v4 = vmul.f32 %v3686_v61, %v1606_v2  ;;  %3940 = vmatprep.mubr.msk.f32.mxu0 %vm103_vm0, %v4588_v3  ;;  %v4324_v61 = vmov 1.0  }
 0x7c4   :  { %v4592_v6 = vadd.f32 %v3687_v63, %v1612_v4 }
 0x7c6   :  { %3941 = vmatmul.mubr.msk.f32.vlgmr.msra.gmra.mrb[18].mxu0 %vm103_vm0, %v4592_v6 }
 0x899   :  { %v3942_v12 = vpop.f32.mrb[18].mxu0 }
 0x89a   :  { %v1695_v13 = vpop.f32.mrb[19].mxu0  ;;  %v1701_v15 = vadd.f32 %v3942_v12, %v3688_v10 }
 0x89b   :  { %v1696_v14 = vadd.f32 %v3688_v10, %v1695_v13 }
 0x89d   :  { %3959 = vmatprep.mubr.msk.f32.mxu1 %vm1708_vm5, %v1696_v14 }
 0x89e   :  { %3960 = vmatmul.mubr.msk.f32.vlgmr.msra.gmra.mrb[16].mxu1 %vm1708_vm5, %v1701_v15 }
 0x89f   :  { %3980 = vmatprep.mubr.msk.f32.mxu1 %vm4315_vm1, %v4314_v37 }
 0x971   :  { %v3961_v17 = vpop.f32.mrb[16].mxu1 }
 0x972   :  { %v1787_v18 = vadd.f32 %v3961_v17, %v3691_v16  ;;  %v1781_v19 = vpop.f32.mrb[17].mxu1 }
 0x973   :  { %v1782_v20 = vadd.f32 %v3691_v16, %v1781_v19 }
 0x974   :  { %v1793_v21 = vmul.f32 0.70710677, %v1787_v18  ;;  %v1791_v4 = vmul.f32 0.5, %v1787_v18 }
 0x975   :  { %v1792_v22 = vmul.f32 0.70710677, %v1782_v20  ;;  %v1790_v8 = vmul.f32 0.5, %v1782_v20 }
 0x976   :  { %v1799_v23 = vand.u32 2147483647, %v1793_v21  ;;  %vm1795_vm6 = vcmp.lt.f32.partialorder %v1793_v21, 0.0 }
 0x977   :  { %v1798_v24 = vand.u32 2147483647, %v1792_v22  ;;  %vm1794_vm7 = vcmp.lt.f32.partialorder %v1792_v22, 0.0  ;;  %v1797_v62 = vsel %vm1795_vm6, -1.0, %v4324_v61 }
 0x978   :  { %v1801_v25 = vmul.f32 0.3275911, %v1799_v23  ;;  %v1827_v29 = vsub.f32 0.0, %v1799_v23  ;;  %v1796_v1 = vsel %vm1794_vm7, -1.0, %v4324_v61 }
 0x979   :  { %v1800_v26 = vmul.f32 0.3275911, %v1798_v24  ;;  %v1826_v30 = vsub.f32 0.0, %v1798_v24 }
 0x97a   :  { %v1803_v27 = vadd.f32 1.0, %v1801_v25  ;;  %v1829_v32 = vmul.f32 %v1827_v29, %v1799_v23  ;;  %v1856_v29 = vld [vmem:[#allocation4 + $0xa8] sm:$0xff] }
 0x97b   :  { %v1802_v28 = vadd.f32 1.0, %v1800_v26  ;;  %v1828_v34 = vmul.f32 %v1826_v30, %v1798_v24  ;;  %v1854_v26 = vld [vmem:[#allocation4 + $0x98] sm:$0xff] }
 0x97c   :  { %4202 = vrcp.f32 %v1803_v27  ;;  %v1832_v33 = vmul.f32 1.442695, %v1829_v32 }
 0x97d   :  { %4204 = vrcp.f32 %v1802_v28  ;;  %v1830_v47 = vmul.f32 1.442695, %v1828_v34  ;;  %v1855_v28 = vld [vmem:[#allocation4 + $0xa0] sm:$0xff] }
 0x97e   :  { %4206 = vpow2.f32 %v1832_v33  ;;  %v4119_v30 = vpack.c.bf16 %v1856_v29, %v1855_v28  ;;  %v3694_v33 = vld [vmem:[#allocation4 + $0x88] ss:$0 sm:$0xff] }
 0x97f   :  { %4208 = vpow2.f32 %v1830_v47 }
 0x986   :  { %v4203_v31 = vpop.eup %4202 }
 0x987   :  { %v4205_v45 = vpop.eup %4204  ;;  %v1809_v48 = vmul.f32 1.0614054, %v4203_v31 }
 0x988   :  { %v1808_v36 = vmul.f32 1.0614054, %v4205_v45  ;;  %v4207_v46 = vpop.eup %4206 }
 0x989   :  { %v1811_v35 = vadd.f32 -1.4531521, %v1809_v48  ;;  %v4209_v57 = vpop.eup %4208 }
 0x98a   :  { %v1810_v38 = vadd.f32 -1.4531521, %v1808_v36 }
 0x98b   :  { %v1813_v40 = vmul.f32 %v4203_v31, %v1811_v35 }
 0x98c   :  { %v1812_v49 = vmul.f32 %v4205_v45, %v1810_v38 }
 0x98d   :  { %v1815_v50 = vadd.f32 1.4214138, %v1813_v40 }
 0x98e   :  { %v1814_v51 = vadd.f32 1.4214138, %v1812_v49  ;;  %v3695_v49 = vld [vmem:[#allocation4 + $0x89] ss:$0 sm:$0xff] }
 0x98f   :  { %v1817_v52 = vmul.f32 %v4203_v31, %v1815_v50 }
 0x990   :  { %v1816_v53 = vmul.f32 %v4205_v45, %v1814_v51 }
 0x991   :  { %v1819_v54 = vadd.f32 -0.28449672, %v1817_v52 }
 0x992   :  { %v1818_v39 = vadd.f32 -0.28449672, %v1816_v53 }
 0x993   :  { %v1821_v55 = vmul.f32 %v4203_v31, %v1819_v54  ;;  %v3696_v54 = vld [vmem:[#allocation4 + $0x8c] ss:$0 sm:$0xff] }
 0x994   :  { %v1820_v43 = vmul.f32 %v4205_v45, %v1818_v39 }
 0x995   :  { %v1823_v41 = vadd.f32 0.2548296, %v1821_v55 }
 0x996   :  { %v1822_v42 = vadd.f32 0.2548296, %v1820_v43 }
 0x997   :  { %v1825_v44 = vmul.f32 %v4203_v31, %v1823_v41 }
 0x998   :  { %v1824_v56 = vmul.f32 %v4205_v45, %v1822_v42 }
 0x999   :  { %v1835_v58 = vmul.f32 %v4207_v46, %v1825_v44 }
 0x99a   :  { %v1834_v59 = vmul.f32 %v4209_v57, %v1824_v56 }
 0x99b   :  { %v1837_v60 = vsub.f32 1.0, %v1835_v58 }
 0x99c   :  { %v1836_v63 = vsub.f32 1.0, %v1834_v59 }
 0x99d   :  { %v1839_v0 = vmul.f32 %v1837_v60, %v1797_v62 }
 0x99e   :  { %v1838_v2 = vmul.f32 %v1836_v63, %v1796_v1 }
 0x99f   :  { %v1841_v7 = vadd.f32 1.0, %v1839_v0 }
 0x9a0   :  { %v1840_v9 = vadd.f32 1.0, %v1838_v2 }
 0x9a1   :  { %v1843_v10 = vmul.f32 %v1841_v7, %v1791_v4 }
 0x9a2   :  { %v1842_v12 = vmul.f32 %v1840_v9, %v1790_v8 }
 0x9a3   :  { %v1845_v13 = vadd.f32 %v1843_v10, %v4592_v6 }
 0x9a4   :  { %v1844_v14 = vadd.f32 %v1842_v12, %v4588_v3  ;;  %v1853_v3 = vld [vmem:[#allocation4 + $0x90] sm:$0xff] }
 0x9a5   :  { %v1872_v15 = vsel %vm103_vm0, %v1845_v13, 0.0  ;;  %v4115_v27 = vpack.c.bf16 %v1854_v26, %v1853_v3 }
 0x9a6   :  { %1873 = vadd.xlane.f32.xlu1 %v1872_v15  ;;  %v1869_v16 = vsel %vm103_vm0, %v1844_v14, 0.0 }
 0x9a7   :  { %1870 = vadd.xlane.f32.xlu0 %v1869_v16  ;;  %4116 = vmatprep.subr.bf16.mxu0 %v4115_v27 }
 0x9a8   :  { %4118 = vmatpush3.bf16.msra.mxu0 %v4115_v27 }
 0x9a9   :  { %4120 = vmatprep.subr.bf16.mxu0 %v4119_v30 }
 0x9ac   :  { %4122 = vmatpush3.bf16.msra.mxu0 %v4119_v30 }
 0x9ad   :  { %3973 = vmatprep.subr.mxu0 %v4314_v37 }
 0xa33   :  { %v1874_v17 = vpop.xlane.xlu1 %1873 }
 0xa34   :  { %v1876_v19 = vmul.f32 0.03125, %v1874_v17  ;;  %v1871_v21 = vpop.xlane.xlu0 %1870 }
 0xa35   :  { %v1875_v22 = vmul.f32 0.03125, %v1871_v21 }
 0xa36   :  { %v1878_v18 = vsub.f32 %v1845_v13, %v1876_v19 }
 0xa37   :  { %v1877_v23 = vsub.f32 %v1844_v14, %v1875_v22 }
 0xa38   :  { %v1880_v20 = vmul.f32 %v1878_v18, %v1878_v18 }
 0xa39   :  { %v1879_v24 = vmul.f32 %v1877_v23, %v1877_v23 }
 0xa3a   :  { %v1884_v25 = vsel %vm103_vm0, %v1880_v20, 0.0 }
 0xa3b   :  { %1885 = vadd.xlane.f32.xlu1 %v1884_v25  ;;  %v1881_v6 = vsel %vm103_vm0, %v1879_v24, 0.0 }
 0xa3c   :  { %1882 = vadd.xlane.f32.xlu0 %v1881_v6 }
 0xac8   :  { %v1886_v31 = vpop.xlane.xlu1 %1885 }
 0xac9   :  { %v1888_v32 = vmul.f32 0.03125, %v1886_v31  ;;  %v1883_v45 = vpop.xlane.xlu0 %1882 }
 0xaca   :  { %v1887_v48 = vmul.f32 0.03125, %v1883_v45 }
 0xacb   :  { %v1890_v34 = vadd.f32 1e-05, %v1888_v32 }
 0xacc   :  { %v1889_v36 = vadd.f32 1e-05, %v1887_v48 }
 0xacd   :  { %4210 = vrsqrt.f32 %v1890_v34 }
 0xace   :  { %4212 = vrsqrt.f32 %v1889_v36 }
 0xad7   :  { %v4211_v35 = vpop.eup %4210 }
 0xad8   :  { %v4213_v38 = vpop.eup %4212  ;;  %v1894_v40 = vmul.f32 %v4211_v35, %v1878_v18 }
 0xad9   :  { %v1893_v47 = vmul.f32 %v4213_v38, %v1877_v23 }
 0xada   :  { %v1900_v50 = vmul.f32 %v3694_v33, %v1894_v40 }
 0xadb   :  { %v1899_v51 = vmul.f32 %v3694_v33, %v1893_v47 }
 0xadc   :  { %v4612_v53 = vadd.f32 %v3695_v49, %v1900_v50 }
 0xadd   :  { %v4610_v52 = vadd.f32 %v3695_v49, %v1899_v51 }
 0xadf   :  { %3970 = vmatprep.mubr.msk.f32.mxu0 %vm103_vm0, %v4610_v52 }
 0xae0   :  { %3971 = vmatmul.mubr.msk.f32.vlgmr.msra.gmra.mrb[20].mxu0 %vm103_vm0, %v4612_v53 }
 0xae1   :  { %3975 = vmatprep.mubr.msk.f32.mxu0 %vm4315_vm1, %v4314_v37 }
 0xbb3   :  { %v3972_v39 = vpop.f32.mrb[20].mxu0 }
 0xbb4   :  { %v4620_v55 = vadd.f32 %v3972_v39, %v3696_v54  ;;  %v1983_v43 = vpop.f32.mrb[21].mxu0 }
 0xbb5   :  { %v4622_v41 = vadd.f32 %v3696_v54, %v1983_v43 }
 0xbb6   :  { %1996 = vrot.lane.b32.xlu1 %v4620_v55, %s4316_s2 }
 0xbb7   :  { %1994 = vrot.lane.b32.xlu0 %v4622_v41, %s4316_s2 }
 0xbba   :  { %1998 = vrot.lane.b32.xlu1 %v4622_v41, %s4317_s10 }
 0xbbb   :  { %2002 = vrot.lane.b32.xlu0 %v4622_v41, %s4318_s11 }
 0xbbe   :  { %2000 = vrot.lane.b32.xlu1 %v4620_v55, %s4317_s10 }
 0xbbf   :  { %2006 = vrot.lane.b32.xlu0 %v4622_v41, %s4319_s12 }
 0xbc2   :  { %2004 = vrot.lane.b32.xlu1 %v4620_v55, %s4318_s11 }
 0xbc6   :  { %2082 = vrot.lane.b32.xlu1 %v4620_v55, %s4319_s12 }
 0xc28   :  { %v4640_v42 = vpop.permute.xlu1 %1996 }
 0xc29   :  { %2234 = vrot.lane.b32.xlu1 %v4640_v42, %s4319_s12  ;;  %v4644_v44 = vpop.permute.xlu0 %1994 }
 0xc2a   :  { %2158 = vrot.lane.b32.xlu0 %v4644_v44, %s4319_s12 }
 0xc2c   :  { %v4648_v46 = vpop.permute.xlu1 %1998 }
 0xc2d   :  { %v4650_v56 = vpop.permute.xlu0 %2002 }
 0xc2e   :  { %2310 = vrot.lane.b32.xlu0 %v4648_v46, %s4319_s12 }
 0xc30   :  { %v4654_v57 = vpop.permute.xlu1 %2000 }
 0xc31   :  { %2386 = vrot.lane.b32.xlu1 %v4654_v57, %s4319_s12  ;;  %v2007_v58 = vpop.permute.xlu0 %2006 }
 0xc32   :  { %2462 = vrot.lane.b32.xlu0 %v4650_v56, %s4319_s12  ;;  %3974 = vmatpush3.xpose.msk.msra.mxu0 %vm244_vm2, %v2007_v58 }
 0xc33   :  { %3983 = vmatprep.subr.mxu0 %v4314_v37 }
 0xc34   :  { %v4662_v59 = vpop.permute.xlu1 %2004 }
 0xc35   :  { %2538 = vrot.lane.b32.xlu1 %v4662_v59, %s4319_s12  ;;  %3976 = vmatmul.mubr.msk.f32.vlgmr.msra.gmra.mrb[22].mxu0 %vm244_vm2, %v4622_v41 }
 0xc36   :  { %3985 = vmatprep.mubr.msk.f32.mxu0 %vm4315_vm1, %v4314_v37 }
 0xc38   :  { %v2083_v60 = vpop.permute.xlu1 %2082 }
 0xc39   :  { %3979 = vmatpush3.xpose.msk.msra.mxu1 %vm244_vm2, %v2083_v60 }
 0xc3a   :  { %3988 = vmatprep.subr.mxu1 %v4314_v37 }
 0xc3c   :  { %3981 = vmatmul.mubr.msk.f32.vlgmr.msra.gmra.mrb[18].mxu1 %vm244_vm2, %v4620_v55 }
 0xc3d   :  { %3990 = vmatprep.mubr.msk.f32.mxu1 %vm4315_vm1, %v4314_v37 }
 0xc9b   :  { %v2235_v62 = vpop.permute.xlu1 %2234 }
 0xc9c   :  { %3989 = vmatpush3.xpose.msk.msra.mxu1 %vm244_vm2, %v2235_v62  ;;  %v2159_v63 = vpop.permute.xlu0 %2158 }
 0xc9d   :  { %3984 = vmatpush3.xpose.msk.msra.mxu0 %vm244_vm2, %v2159_v63  ;;  %3998 = vmatprep.subr.mxu1 %v4314_v37 }
 0xc9e   :  { %3993 = vmatprep.subr.mxu0 %v4314_v37 }
 0xc9f   :  { %3991 = vmatmul.mubr.msk.f32.vlgmr.msra.gmra.mrb[20].mxu1 %vm244_vm2, %v4640_v42 }
 0xca0   :  { %3986 = vmatmul.mubr.msk.f32.vlgmr.msra.gmra.mrb[24].mxu0 %vm244_vm2, %v4644_v44  ;;  %v2311_v0 = vpop.permute.xlu0 %2310  ;;  %4000 = vmatprep.mubr.msk.f32.mxu1 %vm4315_vm1, %v4314_v37 }
 0xca1   :  { %3994 = vmatpush3.xpose.msk.msra.mxu0 %vm244_vm2, %v2311_v0  ;;  %3995 = vmatprep.mubr.msk.f32.mxu0 %vm4315_vm1, %v4314_v37 }
 0xca2   :  { %4003 = vmatprep.subr.mxu0 %v4314_v37 }
 0xca3   :  { %v2387_v1 = vpop.permute.xlu1 %2386 }
 0xca4   :  { %3996 = vmatmul.mubr.msk.f32.vlgmr.msra.gmra.mrb[26].mxu0 %vm244_vm2, %v4648_v46  ;;  %3999 = vmatpush3.xpose.msk.msra.mxu1 %vm244_vm2, %v2387_v1  ;;  %v2463_v2 = vpop.permute.xlu0 %2462 }
 0xca5   :  { %4004 = vmatpush3.xpose.msk.msra.mxu0 %vm244_vm2, %v2463_v2  ;;  %4008 = vmatprep.subr.mxu1 %v4314_v37 }
 0xca6   :  { %4005 = vmatprep.mubr.msk.f32.mxu0 %vm4315_vm1, %v4314_v37  ;;  %4013 = vmatprep.subr.mxu0 %v4314_v37 }
 0xca7   :  { %4001 = vmatmul.mubr.msk.f32.vlgmr.msra.gmra.mrb[22].mxu1 %vm244_vm2, %v4654_v57  ;;  %v2539_v4 = vpop.permute.xlu1 %2538 }
 0xca8   :  { %4006 = vmatmul.mubr.msk.f32.vlgmr.msra.gmra.mrb[28].mxu0 %vm244_vm2, %v4650_v56  ;;  %4009 = vmatpush3.xpose.msk.msra.mxu1 %vm244_vm2, %v2539_v4 }
 0xca9   :  { %4010 = vmatprep.mubr.msk.f32.mxu1 %vm4315_vm1, %v4314_v37  ;;  %4018 = vmatprep.subr.mxu1 %v4314_v37 }
 0xcaa   :  { %4015 = vmatprep.mubr.msk.f32.mxu0 %vm4315_vm1, %v4314_v37 }
 0xcab   :  { %4011 = vmatmul.mubr.msk.f32.vlgmr.msra.gmra.mrb[24].mxu1 %vm244_vm2, %v4662_v59 }
 0xcac   :  { %4020 = vmatprep.mubr.msk.f32.mxu1 %vm4315_vm1, %v4314_v37 }
 0xd08   :  { %v2078_v7 = vpop.f32.mrb[22].mxu0 }
 0xd09   :  { %v2079_v8 = vadd.f32 %v2078_v7, %v4484_v5  ;;  %v3977_v9 = vpop.f32.mrb[23].mxu0 }
 0xd0b   :  { %v2614_v10 = vsel %vm244_vm2, %v2079_v8, -inf }
 0xd0c   :  { %2615 = vmax.xlane.f32.xlu0 %v2614_v10 }
 0xd0f   :  { %v2154_v12 = vpop.f32.mrb[18].mxu1 }
 0xd10   :  { %v2155_v13 = vadd.f32 %v2154_v12, %v4488_v11  ;;  %v3982_v14 = vpop.f32.mrb[19].mxu1 }
 0xd12   :  { %v2617_v15 = vsel %vm244_vm2, %v2155_v13, -inf }
 0xd13   :  { %2618 = vmax.xlane.f32.xlu1 %v2617_v15 }
 0xd72   :  { %v2306_v16 = vpop.f32.mrb[20].mxu1 }
 0xd73   :  { %v2307_v17 = vadd.f32 %v2306_v16, %v4488_v11  ;;  %v2230_v19 = vpop.f32.mrb[24].mxu0  ;;  %v3992_v21 = vpop.f32.mrb[21].mxu1 }
 0xd74   :  { %v3987_v22 = vpop.f32.mrb[25].mxu0  ;;  %v2231_v18 = vadd.f32 %v2230_v19, %v4484_v5 }
 0xd75   :  { %v2623_v23 = vsel %vm244_vm2, %v2307_v17, -inf }
 0xd76   :  { %2624 = vmax.xlane.f32.xlu0 %v2623_v23  ;;  %v2620_v6 = vsel %vm244_vm2, %v2231_v18, -inf }
 0xd77   :  { %v2382_v20 = vpop.f32.mrb[26].mxu0 }
 0xd78   :  { %v3997_v24 = vpop.f32.mrb[27].mxu0  ;;  %v2383_v25 = vadd.f32 %v2382_v20, %v4484_v5 }
 0xd7a   :  { %v2458_v3 = vpop.f32.mrb[22].mxu1  ;;  %2621 = vmax.xlane.f32.xlu0 %v2620_v6  ;;  %v2626_v32 = vsel %vm244_vm2, %v2383_v25, -inf }
 0xd7b   :  { %v2459_v26 = vadd.f32 %v2458_v3, %v4488_v11  ;;  %v4002_v27 = vpop.f32.mrb[23].mxu1  ;;  %v2534_v28 = vpop.f32.mrb[28].mxu0 }
 0xd7c   :  { %v4007_v29 = vpop.f32.mrb[29].mxu0  ;;  %v2535_v30 = vadd.f32 %v2534_v28, %v4484_v5 }
 0xd7d   :  { %v2629_v31 = vsel %vm244_vm2, %v2459_v26, -inf }
 0xd7e   :  { %2630 = vmax.xlane.f32.xlu1 %v2629_v31  ;;  %v2610_v45 = vpop.f32.mrb[24].mxu1  ;;  %2627 = vmax.xlane.f32.xlu0 %v2626_v32  ;;  %v2632_v35 = vsel %vm244_vm2, %v2535_v30, -inf }
 0xd7f   :  { %v2611_v48 = vadd.f32 %v2610_v45, %v4488_v11  ;;  %v4012_v34 = vpop.f32.mrb[25].mxu1 }
 0xd81   :  { %v2635_v36 = vsel %vm244_vm2, %v2611_v48, -inf }
 0xd82   :  { %2636 = vmax.xlane.f32.xlu1 %v2635_v36  ;;  %2633 = vmax.xlane.f32.xlu0 %v2632_v35 }
 0xd93   :  { %2778 = vrot.lane.b32.xlu1 %v4620_v55, %s4321_s1 }
 0xd97   :  { %2854 = vrot.lane.b32.xlu1 %v4644_v44, %s4321_s1 }
 0xd98   :  { %2702 = vrot.lane.b32.xlu0 %v4622_v41, %s4321_s1 }
 0xd99   :  { %v2616_v5 = vpop.xlane.xlu0 %2615 }
 0xd9a   :  { %v2638_v11 = vsub.f32 %v2079_v8, %v2616_v5 }
 0xd9b   :  { %2930 = vrot.lane.b32.xlu1 %v4640_v42, %s4321_s1 }
 0xd9c   :  { %3006 = vrot.lane.b32.xlu0 %v4648_v46, %s4321_s1  ;;  %v2646_v33 = vmul.f32 1.442695, %v2638_v11 }
 0xd9e   :  { %4214 = vpow2.f32 %v2646_v33 }
 0xd9f   :  { %3082 = vrot.lane.b32.xlu1 %v4654_v57, %s4321_s1 }
 0xda0   :  { %v2619_v38 = vpop.xlane.xlu1 %2618 }
 0xda1   :  { %v2639_v40 = vsub.f32 %v2155_v13, %v2619_v38 }
 0xda3   :  { %v2648_v47 = vmul.f32 1.442695, %v2639_v40 }
 0xda5   :  { %4216 = vpow2.f32 %v2648_v47 }
 0xda8   :  { %v4740_v49 = vpop.eup %4214 }
 0xda9   :  { %v2662_v50 = vsel %vm244_vm2, %v4740_v49, 0.0 }
 0xdaf   :  { %v4744_v51 = vpop.eup %4216 }
 0xdb0   :  { %v2665_v54 = vsel %vm244_vm2, %v4744_v51, 0.0 }
 0xdbb   :  { %2663 = vadd.xlane.f32.xlu0 %v2662_v50 }
 0xdc3   :  { %2666 = vadd.xlane.f32.xlu1 %v2665_v54 }
 0xe03   :  { %v2625_v39 = vpop.xlane.xlu0 %2624 }
 0xe04   :  { %v2641_v55 = vsub.f32 %v2307_v17, %v2625_v39 }
 0xe06   :  { %v2652_v43 = vmul.f32 1.442695, %v2641_v55 }
 0xe07   :  { %v2622_v41 = vpop.xlane.xlu0 %2621 }
 0xe08   :  { %4218 = vpow2.f32 %v2652_v43  ;;  %v2640_v42 = vsub.f32 %v2231_v18, %v2622_v41 }
 0xe0a   :  { %v2650_v44 = vmul.f32 1.442695, %v2640_v42 }
 0xe0b   :  { %v2631_v46 = vpop.xlane.xlu1 %2630  ;;  %v2628_v57 = vpop.xlane.xlu0 %2627 }
 0xe0c   :  { %4220 = vpow2.f32 %v2650_v44  ;;  %v2643_v58 = vsub.f32 %v2459_v26, %v2631_v46  ;;  %v2642_v60 = vsub.f32 %v2383_v25, %v2628_v57 }
 0xe0e   :  { %v2656_v62 = vmul.f32 1.442695, %v2643_v58  ;;  %v2654_v63 = vmul.f32 1.442695, %v2642_v60 }
 0xe0f   :  { %v2637_v0 = vpop.xlane.xlu1 %2636  ;;  %v2634_v1 = vpop.xlane.xlu0 %2633 }
 0xe10   :  { %4222 = vpow2.f32 %v2656_v62  ;;  %v2645_v2 = vsub.f32 %v2611_v48, %v2637_v0  ;;  %v2644_v4 = vsub.f32 %v2535_v30, %v2634_v1 }
 0xe11   :  { %4224 = vpow2.f32 %v2654_v63 }
 0xe12   :  { %v4219_v7 = vpop.eup %4218  ;;  %v2660_v8 = vmul.f32 1.442695, %v2645_v2  ;;  %v2658_v9 = vmul.f32 1.442695, %v2644_v4 }
 0xe13   :  { %v2779_v10 = vpop.permute.xlu1 %2778  ;;  %v2703_v12 = vpop.permute.xlu0 %2702  ;;  %v2671_v13 = vsel %vm244_vm2, %v4219_v7, 0.0 }
 0xe14   :  { %4226 = vpow2.f32 %v2660_v8  ;;  %4019 = vmatpush3.msra.mxu1 %v2779_v10  ;;  %2672 = vadd.xlane.f32.xlu1 %v2671_v13 }
 0xe15   :  { %4228 = vpow2.f32 %v2658_v9  ;;  %4014 = vmatpush3.msra.mxu0 %v2703_v12  ;;  %4028 = vmatprep.subr.mxu1 %v4314_v37 }
 0xe16   :  { %v4221_v14 = vpop.eup %4220  ;;  %4023 = vmatprep.subr.mxu0 %v4314_v37 }
 0xe17   :  { %v2668_v15 = vsel %vm244_vm2, %v4221_v14, 0.0  ;;  %v2855_v24 = vpop.permute.xlu1 %2854  ;;  %v3007_v25 = vpop.permute.xlu0 %3006 }
 0xe18   :  { %2669 = vadd.xlane.f32.xlu0 %v2668_v15 }
 0xe1a   :  { %v4223_v16 = vpop.eup %4222 }
 0xe1b   :  { %v4225_v17 = vpop.eup %4224  ;;  %v2677_v19 = vsel %vm244_vm2, %v4223_v16, 0.0  ;;  %v2931_v6 = vpop.permute.xlu1 %2930 }
 0xe1c   :  { %2678 = vadd.xlane.f32.xlu1 %v2677_v19  ;;  %v2674_v21 = vsel %vm244_vm2, %v4225_v17, 0.0 }
 0xe1d   :  { %2675 = vadd.xlane.f32.xlu0 %v2674_v21 }
 0xe1e   :  { %v4754_v22 = vpop.eup %4226 }
 0xe1f   :  { %v4756_v18 = vpop.eup %4228  ;;  %v2683_v23 = vsel %vm244_vm2, %v4754_v22, 0.0  ;;  %v3083_v26 = vpop.permute.xlu1 %3082 }
 0xe20   :  { %2684 = vadd.xlane.f32.xlu1 %v2683_v23  ;;  %v2680_v20 = vsel %vm244_vm2, %v4756_v18, 0.0 }
 0xe21   :  { %2681 = vadd.xlane.f32.xlu0 %v2680_v20 }
 0xe31   :  { %3234 = vrot.lane.b32.xlu1 %v4662_v59, %s4321_s1 }
 0xe37   :  { %3158 = vrot.lane.b32.xlu0 %v4650_v56, %s4321_s1 }
 0xe48   :  { %v2664_v3 = vpop.xlane.xlu0 %2663 }
 0xe49   :  { %4230 = vrcp.f32 %v2664_v3 }
 0xe50   :  { %v2667_v27 = vpop.xlane.xlu1 %2666 }
 0xe51   :  { %4232 = vrcp.f32 %v2667_v27 }
 0xe53   :  { %v4231_v28 = vpop.eup %4230 }
 0xe54   :  { %v2694_v29 = vmul.f32 %v4231_v28, %v4740_v49 }
 0xe56   :  { %4016 = vmatmul.mubr.msk.f32.vlgmr.msra.gmra.mrb[30].mxu0 %vm244_vm2, %v2694_v29 }
 0xe57   :  { %4024 = vmatpush3.msra.mxu0 %v2855_v24  ;;  %4025 = vmatprep.mubr.msk.f32.mxu0 %vm4315_vm1, %v4314_v37 }
 0xe58   :  { %4033 = vmatprep.subr.mxu0 %v4314_v37 }
 0xe5b   :  { %v4233_v56 = vpop.eup %4232 }
 0xe5c   :  { %v2695_v59 = vmul.f32 %v4233_v56, %v4744_v51 }
 0xe5e   :  { %4021 = vmatmul.mubr.msk.f32.vlgmr.msra.gmra.mrb[26].mxu1 %vm244_vm2, %v2695_v59 }
 0xe5f   :  { %4029 = vmatpush3.msra.mxu1 %v2931_v6  ;;  %4030 = vmatprep.mubr.msk.f32.mxu1 %vm4315_vm1, %v4314_v37 }
 0xe60   :  { %4038 = vmatprep.subr.mxu1 %v4314_v37 }
 0xea1   :  { %v2673_v30 = vpop.xlane.xlu1 %2672 }
 0xea2   :  { %4234 = vrcp.f32 %v2673_v30  ;;  %v1858_v30 = vld [vmem:[#allocation4 + $0xb8] sm:$0xff] }
 0xea5   :  { %v2670_v31 = vpop.xlane.xlu0 %2669 }
 0xea6   :  { %4236 = vrcp.f32 %v2670_v31 }
 0xea9   :  { %v2679_v32 = vpop.xlane.xlu1 %2678 }
 0xeaa   :  { %4238 = vrcp.f32 %v2679_v32  ;;  %v2676_v45 = vpop.xlane.xlu0 %2675  ;;  %v1859_v32 = vld [vmem:[#allocation4 + $0xc0] sm:$0xff] }
 0xeab   :  { %4240 = vrcp.f32 %v2676_v45  ;;  %v1860_v45 = vld [vmem:[#allocation4 + $0xc8] sm:$0xff] }
 0xeac   :  { %v4235_v48 = vpop.eup %4234 }
 0xead   :  { %v2697_v34 = vmul.f32 %v4235_v48, %v4219_v7  ;;  %v2685_v36 = vpop.xlane.xlu1 %2684  ;;  %v4127_v48 = vpack.c.bf16 %v1860_v45, %v1859_v32 }
 0xeae   :  { %4242 = vrcp.f32 %v2685_v36  ;;  %v2682_v35 = vpop.xlane.xlu0 %2681  ;;  %v1862_v36 = vld [vmem:[#allocation4 + $0xd8] sm:$0xff] }
 0xeaf   :  { %4244 = vrcp.f32 %v2682_v35  ;;  %4031 = vmatmul.mubr.msk.f32.vlgmr.msra.gmra.mrb[28].mxu1 %vm244_vm2, %v2697_v34  ;;  %v1861_v34 = vld [vmem:[#allocation4 + $0xd0] sm:$0xff]  ;;  %v1863_v35 = vld [vmem:[#allocation4 + $0xe0] sm:$0xff] }
 0xeb0   :  { %v4237_v5 = vpop.eup %4236  ;;  %4039 = vmatpush3.msra.mxu1 %v3083_v26  ;;  %4040 = vmatprep.mubr.msk.f32.mxu1 %vm4315_vm1, %v4314_v37 }
 0xeb1   :  { %v2696_v11 = vmul.f32 %v4237_v5, %v4221_v14  ;;  %4048 = vmatprep.subr.mxu1 %v4314_v37  ;;  %v3235_v49 = vpop.permute.xlu1 %3234  ;;  %v4131_v5 = vpack.c.bf16 %v1862_v36, %v1861_v34 }
 0xeb2   :  { %v3159_v51 = vpop.permute.xlu0 %3158 }
 0xeb3   :  { %4026 = vmatmul.mubr.msk.f32.vlgmr.msra.gmra.mrb[32].mxu0 %vm244_vm2, %v2696_v11  ;;  %v1864_v11 = vld [vmem:[#allocation4 + $0xe8] sm:$0xff] }
 0xeb4   :  { %v4239_v33 = vpop.eup %4238  ;;  %4034 = vmatpush3.msra.mxu0 %v3007_v25  ;;  %4035 = vmatprep.mubr.msk.f32.mxu0 %vm4315_vm1, %v4314_v37 }
 0xeb5   :  { %v4241_v38 = vpop.eup %4240  ;;  %v2699_v40 = vmul.f32 %v4239_v33, %v4223_v16  ;;  %4043 = vmatprep.subr.mxu0 %v4314_v37  ;;  %v4135_v33 = vpack.c.bf16 %v1864_v11, %v1863_v35 }
 0xeb6   :  { %v2698_v47 = vmul.f32 %v4241_v38, %v4225_v17  ;;  %v1865_v38 = vld [vmem:[#allocation4 + $0xf0] sm:$0xff] }
 0xeb7   :  { %4041 = vmatmul.mubr.msk.f32.vlgmr.msra.gmra.mrb[30].mxu1 %vm244_vm2, %v2699_v40  ;;  %v1866_v40 = vld [vmem:[#allocation4 + $0xf8] sm:$0xff] }
 0xeb8   :  { %v4243_v50 = vpop.eup %4242  ;;  %4036 = vmatmul.mubr.msk.f32.vlgmr.msra.gmra.mrb[34].mxu0 %vm244_vm2, %v2698_v47  ;;  %4049 = vmatpush3.msra.mxu1 %v3235_v49  ;;  %v4139_v47 = vpack.c.bf16 %v1866_v40, %v1865_v38 }
 0xeb9   :  { %v4245_v54 = vpop.eup %4244  ;;  %v2701_v39 = vmul.f32 %v4243_v50, %v4754_v22  ;;  %4044 = vmatpush3.msra.mxu0 %v3159_v51  ;;  %4045 = vmatprep.mubr.msk.f32.mxu0 %vm4315_vm1, %v4314_v37 }
 0xeba   :  { %v2700_v55 = vmul.f32 %v4245_v54, %v4756_v18  ;;  %4050 = vmatprep.mubr.msk.f32.mxu1 %vm4315_vm1, %v4314_v37  ;;  %4132 = vmatprep.subr.bf16.mxu1 %v4131_v5 }
 0xebb   :  { %4051 = vmatmul.mubr.msk.f32.vlgmr.msra.gmra.mrb[32].mxu1 %vm244_vm2, %v2701_v39 }
 0xebc   :  { %4046 = vmatmul.mubr.msk.f32.vlgmr.msra.gmra.mrb[36].mxu0 %vm244_vm2, %v2700_v55  ;;  %4134 = vmatpush3.bf16.msra.mxu1 %v4131_v5 }
 0xebd   :  { %4136 = vmatprep.subr.bf16.mxu1 %v4135_v33 }
 0xec0   :  { %4138 = vmatpush3.bf16.msra.mxu1 %v4135_v33 }
 0xec1   :  { %4140 = vmatprep.subr.bf16.mxu1 %v4139_v47 }
 0xec4   :  { %4142 = vmatpush3.bf16.msra.mxu1 %v4139_v47 }
 0xf29   :  { %v2774_v43 = vpop.f32.mrb[30].mxu0 }
 0xf2a   :  { %v4017_v41 = vpop.f32.mrb[31].mxu0 }
 0xf2b   :  { %v3723_v41 = vld [vmem:[#allocation4 + $0x8a] ss:$0 sm:$0xff] }
 0xf31   :  { %v2850_v42 = vpop.f32.mrb[26].mxu1 }
 0xf32   :  { %v4022_v44 = vpop.f32.mrb[27].mxu1 }
 0xf33   :  { %v3724_v44 = vld [vmem:[#allocation4 + $0x8b] ss:$0 sm:$0xff] }
 0xf82   :  { %v3002_v46 = vpop.f32.mrb[28].mxu1 }
 0xf83   :  { %3314 = vrot.lane.b32.xlu1 %v3002_v46, %s4312_s23  ;;  %v4032_v57 = vpop.f32.mrb[29].mxu1 }
 0xf86   :  { %v2926_v58 = vpop.f32.mrb[32].mxu0 }
 0xf87   :  { %3312 = vrot.lane.b32.xlu0 %v2926_v58, %s4312_s23  ;;  %v4027_v60 = vpop.f32.mrb[33].mxu0 }
 0xf8a   :  { %v3154_v62 = vpop.f32.mrb[30].mxu1 }
 0xf8b   :  { %v3078_v63 = vpop.f32.mrb[34].mxu0  ;;  %3322 = vrot.lane.b32.xlu1 %v3154_v62, %s4322_s15  ;;  %v4042_v37 = vpop.f32.mrb[31].mxu1 }
 0xf8c   :  { %3320 = vrot.lane.b32.xlu0 %v3078_v63, %s4322_s15  ;;  %v4037_v0 = vpop.f32.mrb[35].mxu0  ;;  %v1867_v37 = vld [vmem:[#allocation4 + $0x100] sm:$0xff] }
 0xf8d   :  { %v1868_v0 = vld [vmem:[#allocation4 + $0x108] sm:$0xff] }
 0xf8e   :  { %v3306_v1 = vpop.f32.mrb[32].mxu1 }
 0xf8f   :  { %v3230_v2 = vpop.f32.mrb[36].mxu0  ;;  %3330 = vrot.lane.b32.xlu1 %v3306_v1, %s4323_s16  ;;  %v4052_v4 = vpop.f32.mrb[33].mxu1  ;;  %v4143_v1 = vpack.c.bf16 %v1868_v0, %v1867_v37 }
 0xf90   :  { %3328 = vrot.lane.b32.xlu0 %v3230_v2, %s4323_s16  ;;  %v4047_v7 = vpop.f32.mrb[37].mxu0  ;;  %v3725_v2 = vld [vmem:[#allocation4 + $0x8d] ss:$0 sm:$0xff] }
 0xf91   :  { %4144 = vmatprep.subr.bf16.mxu1 %v4143_v1 }
 0xf92   :  { %4146 = vmatpush3.bf16.msra.mxu1 %v4143_v1 }
 0xff5   :  { %v3315_v8 = vpop.permute.xlu1 %3314 }
 0xff6   :  { %v3335_v13 = vsel %vm244_vm2, %v2850_v42, %v3315_v8 }
 0xff9   :  { %v3313_v9 = vpop.permute.xlu0 %3312 }
 0xffa   :  { %v3334_v14 = vsel %vm244_vm2, %v2774_v43, %v3313_v9 }
 0xffd   :  { %v3323_v10 = vpop.permute.xlu1 %3322 }
 0xffe   :  { %v3321_v12 = vpop.permute.xlu0 %3320  ;;  %v3337_v15 = vsel %vm1573_vm3, %v3335_v13, %v3323_v10  ;;  %v3728_v10 = vld [vmem:[#allocation4 + $0x8e] ss:$0 sm:$0xff] }
 0xfff   :  { %v3336_v17 = vsel %vm1573_vm3, %v3334_v14, %v3321_v12 }
0x1001   :  { %v3331_v16 = vpop.permute.xlu1 %3330 }
0x1002   :  { %v3339_v19 = vsel %vm1576_vm4, %v3337_v15, %v3331_v16  ;;  %v3329_v21 = vpop.permute.xlu0 %3328 }
0x1003   :  { %v3341_v22 = vadd.f32 %v3339_v19, %v4612_v53  ;;  %v3338_v18 = vsel %vm1576_vm4, %v3336_v17, %v3329_v21 }
0x1004   :  { %v3340_v23 = vadd.f32 %v3338_v18, %v4610_v52  ;;  %v1857_v52 = vld [vmem:[#allocation4 + $0xb0] sm:$0xff] }
0x1005   :  { %v3345_v20 = vsel %vm103_vm0, %v3341_v22, 0.0  ;;  %v4123_v31 = vpack.c.bf16 %v1858_v30, %v1857_v52 }
0x1006   :  { %3346 = vadd.xlane.f32.xlu1 %v3345_v20  ;;  %v3342_v24 = vsel %vm103_vm0, %v3340_v23, 0.0 }
0x1007   :  { %3343 = vadd.xlane.f32.xlu0 %v3342_v24  ;;  %4124 = vmatprep.subr.bf16.mxu0 %v4123_v31 }
0x1008   :  { %4126 = vmatpush3.bf16.msra.mxu0 %v4123_v31 }
0x1009   :  { %4128 = vmatprep.subr.bf16.mxu0 %v4127_v48 }
0x100c   :  { %4130 = vmatpush3.bf16.msra.mxu0 %v4127_v48 }
0x1093   :  { %v3347_v25 = vpop.xlane.xlu1 %3346 }
0x1094   :  { %v3349_v6 = vmul.f32 0.03125, %v3347_v25  ;;  %v3344_v3 = vpop.xlane.xlu0 %3343 }
0x1095   :  { %v3348_v26 = vmul.f32 0.03125, %v3344_v3 }
0x1096   :  { %v3351_v27 = vsub.f32 %v3341_v22, %v3349_v6 }
0x1097   :  { %v3350_v28 = vsub.f32 %v3340_v23, %v3348_v26 }
0x1098   :  { %v3353_v53 = vmul.f32 %v3351_v27, %v3351_v27 }
0x1099   :  { %v3352_v29 = vmul.f32 %v3350_v28, %v3350_v28 }
0x109a   :  { %v3357_v59 = vsel %vm103_vm0, %v3353_v53, 0.0 }
0x109b   :  { %v3354_v56 = vsel %vm103_vm0, %v3352_v29, 0.0 }
0x109c   :  { %3355 = vadd.xlane.f32.xlu0 %v3354_v56 }
0x10a0   :  { %3358 = vadd.xlane.f32.xlu0 %v3357_v59 }
0x1129   :  { %v3356_v49 = vpop.xlane.xlu0 %3355 }
0x112a   :  { %v3360_v50 = vmul.f32 0.03125, %v3356_v49 }
0x112c   :  { %v3362_v51 = vadd.f32 1e-05, %v3360_v50 }
0x112d   :  { %v3359_v54 = vpop.xlane.xlu0 %3358 }
0x112e   :  { %4246 = vrsqrt.f32 %v3362_v51  ;;  %v3361_v39 = vmul.f32 0.03125, %v3359_v54 }
0x1130   :  { %v3363_v55 = vadd.f32 1e-05, %v3361_v39 }
0x1132   :  { %4248 = vrsqrt.f32 %v3363_v55 }
0x1138   :  { %v4247_v43 = vpop.eup %4246 }
0x1139   :  { %v3366_v42 = vmul.f32 %v4247_v43, %v3350_v28 }
0x113b   :  { %v3372_v46 = vmul.f32 %v3723_v41, %v3366_v42 }
0x113c   :  { %v4249_v57 = vpop.eup %4248 }
0x113d   :  { %v3367_v58 = vmul.f32 %v4249_v57, %v3351_v27  ;;  %v4812_v60 = vadd.f32 %v3724_v44, %v3372_v46 }
0x113f   :  { %v3373_v62 = vmul.f32 %v3723_v41, %v3367_v58  ;;  %4061 = vmatprep.mubr.msk.f32.mxu0 %vm103_vm0, %v4812_v60 }
0x1141   :  { %v4816_v63 = vadd.f32 %v3724_v44, %v3373_v62 }
0x1143   :  { %4062 = vmatmul.mubr.msk.f32.vlgmr.msra.gmra.mrb[38].mxu0 %vm103_vm0, %v4816_v63 }
0x1216   :  { %v4063_v4 = vpop.f32.mrb[38].mxu0 }
0x1217   :  { %v3456_v7 = vpop.f32.mrb[39].mxu0  ;;  %v3462_v9 = vadd.f32 %v4063_v4, %v3725_v2 }
0x1218   :  { %v3457_v8 = vadd.f32 %v3725_v2, %v3456_v7 }
0x121a   :  { %4080 = vmatprep.mubr.msk.f32.mxu1 %vm1708_vm5, %v3457_v8 }
0x121b   :  { %4081 = vmatmul.mubr.msk.f32.vlgmr.msra.gmra.mrb[34].mxu1 %vm1708_vm5, %v3462_v9 }
0x12ee   :  { %v4082_v12 = vpop.f32.mrb[34].mxu1 }
0x12ef   :  { %v3547_v13 = vadd.f32 %v4082_v12, %v3728_v10  ;;  %v3541_v14 = vpop.f32.mrb[35].mxu1 }
0x12f0   :  { %v3542_v15 = vadd.f32 %v3728_v10, %v3541_v14 }
0x12f1   :  { %v3553_v16 = vmul.f32 0.70710677, %v3547_v13  ;;  %v3551_v46 = vmul.f32 0.5, %v3547_v13 }
0x12f2   :  { %v3552_v17 = vmul.f32 0.70710677, %v3542_v15  ;;  %v3550_v58 = vmul.f32 0.5, %v3542_v15 }
0x12f3   :  { %v3559_v19 = vand.u32 2147483647, %v3553_v16  ;;  %vm3555_vm8 = vcmp.lt.f32.partialorder %v3553_v16, 0.0 }
0x12f4   :  { %v3558_v21 = vand.u32 2147483647, %v3552_v17  ;;  %vm3554_vm9 = vcmp.lt.f32.partialorder %v3552_v17, 0.0  ;;  %v3557_v55 = vsel %vm3555_vm8, -1.0, %v4324_v61 }
0x12f5   :  { %v3561_v22 = vmul.f32 0.3275911, %v3559_v19  ;;  %v3587_v24 = vsub.f32 0.0, %v3559_v19  ;;  %v3556_v42 = vsel %vm3554_vm9, -1.0, %v4324_v61 }
0x12f6   :  { %v3560_v18 = vmul.f32 0.3275911, %v3558_v21  ;;  %v3586_v25 = vsub.f32 0.0, %v3558_v21 }
0x12f7   :  { %v3563_v23 = vadd.f32 1.0, %v3561_v22  ;;  %v3589_v3 = vmul.f32 %v3587_v24, %v3559_v19 }
0x12f8   :  { %v3562_v20 = vadd.f32 1.0, %v3560_v18  ;;  %v3588_v28 = vmul.f32 %v3586_v25, %v3558_v21 }
0x12f9   :  { %4250 = vrcp.f32 %v3563_v23  ;;  %v3592_v53 = vmul.f32 1.442695, %v3589_v3 }
0x12fa   :  { %4252 = vrcp.f32 %v3562_v20  ;;  %v3590_v30 = vmul.f32 1.442695, %v3588_v28  ;;  %v3731_v20 = vld [vmem:[#allocation4 + $0x110] ss:$0 sm:$0xff] }
0x12fb   :  { %4254 = vpow2.f32 %v3592_v53 }
0x12fc   :  { %4256 = vpow2.f32 %v3590_v30 }
0x1303   :  { %v4251_v6 = vpop.eup %4250 }
0x1304   :  { %v4253_v26 = vpop.eup %4252  ;;  %v3569_v27 = vmul.f32 1.0614054, %v4251_v6 }
0x1305   :  { %v3568_v29 = vmul.f32 1.0614054, %v4253_v26  ;;  %v4255_v47 = vpop.eup %4254 }
0x1306   :  { %v3571_v56 = vadd.f32 -1.4531521, %v3569_v27  ;;  %v4257_v50 = vpop.eup %4256 }
0x1307   :  { %v3570_v59 = vadd.f32 -1.4531521, %v3568_v29 }
0x1308   :  { %v3573_v52 = vmul.f32 %v4251_v6, %v3571_v56 }
0x1309   :  { %v3572_v31 = vmul.f32 %v4253_v26, %v3570_v59 }
0x130a   :  { %v3575_v32 = vadd.f32 1.4214138, %v3573_v52 }
0x130b   :  { %v3574_v45 = vadd.f32 1.4214138, %v3572_v31 }
0x130c   :  { %v3577_v48 = vmul.f32 %v4251_v6, %v3575_v32 }
0x130d   :  { %v3576_v34 = vmul.f32 %v4253_v26, %v3574_v45 }
0x130e   :  { %v3579_v36 = vadd.f32 -0.28449672, %v3577_v48 }
0x130f   :  { %v3578_v35 = vadd.f32 -0.28449672, %v3576_v34 }
0x1310   :  { %v3581_v5 = vmul.f32 %v4251_v6, %v3579_v36 }
0x1311   :  { %v3580_v11 = vmul.f32 %v4253_v26, %v3578_v35 }
0x1312   :  { %v3583_v33 = vadd.f32 0.2548296, %v3581_v5 }
0x1313   :  { %v3582_v38 = vadd.f32 0.2548296, %v3580_v11 }
0x1314   :  { %v3585_v40 = vmul.f32 %v4251_v6, %v3583_v33  ;;  %v3732_v6 = vld [vmem:[#allocation4 + $0x111] ss:$0 sm:$0xff] }
0x1315   :  { %v3584_v49 = vmul.f32 %v4253_v26, %v3582_v38 }
0x1316   :  { %v3595_v51 = vmul.f32 %v4255_v47, %v3585_v40 }
0x1317   :  { %v3594_v54 = vmul.f32 %v4257_v50, %v3584_v49 }
0x1318   :  { %v3597_v39 = vsub.f32 1.0, %v3595_v51 }
0x1319   :  { %v3596_v43 = vsub.f32 1.0, %v3594_v54 }
0x131a   :  { %v3599_v41 = vmul.f32 %v3597_v39, %v3557_v55 }
0x131b   :  { %v3598_v44 = vmul.f32 %v3596_v43, %v3556_v42 }
0x131c   :  { %v3601_v57 = vadd.f32 1.0, %v3599_v41 }
0x131d   :  { %v3600_v62 = vadd.f32 1.0, %v3598_v44 }
0x131e   :  { %v3603_v37 = vmul.f32 %v3601_v57, %v3551_v46 }
0x131f   :  { %v3602_v0 = vmul.f32 %v3600_v62, %v3550_v58 }
0x1320   :  { %v3605_v1 = vadd.f32 %v3603_v37, %v4816_v63 }
0x1321   :  { %v3604_v2 = vadd.f32 %v3602_v0, %v4812_v60 }
0x1322   :  { %v3611_v4 = vsel %vm103_vm0, %v3605_v1, 0.0 }
0x1323   :  { %3612 = vadd.xlane.f32.xlu1 %v3611_v4  ;;  %v3608_v7 = vsel %vm103_vm0, %v3604_v2, 0.0 }
0x1324   :  { %3609 = vadd.xlane.f32.xlu0 %v3608_v7 }
0x13b0   :  { %v3613_v8 = vpop.xlane.xlu1 %3612 }
0x13b1   :  { %v3615_v9 = vmul.f32 0.03125, %v3613_v8  ;;  %v3610_v61 = vpop.xlane.xlu0 %3609 }
0x13b2   :  { %v3614_v10 = vmul.f32 0.03125, %v3610_v61 }
0x13b3   :  { %v3617_v12 = vsub.f32 %v3605_v1, %v3615_v9 }
0x13b4   :  { %v3616_v13 = vsub.f32 %v3604_v2, %v3614_v10 }
0x13b5   :  { %v3619_v14 = vmul.f32 %v3617_v12, %v3617_v12 }
0x13b6   :  { %v3618_v15 = vmul.f32 %v3616_v13, %v3616_v13 }
0x13b7   :  { %v3623_v16 = vsel %vm103_vm0, %v3619_v14, 0.0 }
0x13b8   :  { %3624 = vadd.xlane.f32.xlu1 %v3623_v16  ;;  %v3620_v63 = vsel %vm103_vm0, %v3618_v15, 0.0 }
0x13b9   :  { %3621 = vadd.xlane.f32.xlu0 %v3620_v63 }
0x1445   :  { %v3625_v60 = vpop.xlane.xlu1 %3624 }
0x1446   :  { %v3627_v17 = vmul.f32 0.03125, %v3625_v60  ;;  %v3622_v19 = vpop.xlane.xlu0 %3621 }
0x1447   :  { %v3626_v21 = vmul.f32 0.03125, %v3622_v19 }
0x1448   :  { %v3629_v22 = vadd.f32 1e-05, %v3627_v17 }
0x1449   :  { %v3628_v18 = vadd.f32 1e-05, %v3626_v21 }
0x144a   :  { %4258 = vrsqrt.f32 %v3629_v22 }
0x144b   :  { %4260 = vrsqrt.f32 %v3628_v18 }
0x1454   :  { %v4259_v23 = vpop.eup %4258 }
0x1455   :  { %v4261_v24 = vpop.eup %4260  ;;  %v3633_v25 = vmul.f32 %v4259_v23, %v3617_v12 }
0x1456   :  { %v3632_v3 = vmul.f32 %v4261_v24, %v3616_v13 }
0x1457   :  { %v3639_v26 = vmul.f32 %v3731_v20, %v3633_v25 }
0x1458   :  { %v3638_v27 = vmul.f32 %v3731_v20, %v3632_v3 }
0x1459   :  { %v3645_v28 = vadd.f32 %v3732_v6, %v3639_v26 }
0x145a   :  { %v3644_v29 = vadd.f32 %v3732_v6, %v3638_v27 }
0x145b   :  { %v3647_v56 = vsel %vm103_vm0, %v3645_v28, 0.0 }
0x145c   :  { %3649 = vst [vmem:[%s4841_s3 + $0x8] sm:$0xff] %v3647_v56  ;;  %v3646_v53 = vsel %vm103_vm0, %v3644_v29, 0.0 }
0x145d   :  { %3648 = vst [vmem:[%s4841_s3] sm:$0xff] %v3646_v53 }
0x145e   :  { %3654 = vsyncpa [#allocation3], 1 }
0x145f   :  { %3655 = vsyncpa [#allocation5], 1 }

</bundles_post_ra>
